<compile_context>
chip_gen: v7x
topology: tpu7x:2x2x1
jax: 0.10.0
libtpu: 0.0.40
codegen_flags: <defaults>
</compile_context>

<pallas_src>
import functools

import numpy as np
import jax
import jax.numpy as jnp
from jax.experimental import pallas as pl
from jax.experimental.pallas import tpu as pltpu


def _round_up(n, m):
    return ((n + m - 1) // m) * m


def _cdiv(a, b):
    return -(-a // b)


# Rows of the packed (8, 128) per-lane parameter block.
_FN_G, _FN_B, _B1, _G1, _BE1, _B2, _CV = range(7)

# Slices of the packed (5, 128, 128) matrix block.
_W1, _W2, _MFN, _MH, _MTAIL = range(5)


def happo_critic_kernel(x_ref, mats_ref, vec_ref, out_ref, *, n_seg):
    """One row tile.  x_ref: (TRp, 128) with n_seg logical rows lane-packed
    per packed row; out_ref: (TRp, n_seg), one critic value per logical row."""
    eps = 1e-5
    p = n_seg
    hi = jax.lax.Precision.HIGHEST

    def mm(a, b):
        # f32 ('HIGHEST') MXU matmuls keep the kernel faithful to the f32
        # PyTorch module (and the 1e-4 validation tolerance); MXU has headroom.
        return jnp.dot(a, b, precision=hi, preferred_element_type=jnp.float32)

    x = x_ref[...]                               # (TRp, 128)

    w1 = mats_ref[_W1]                           # block-diag fc1 weight
    w2 = mats_ref[_W2]                           # block-diag fc2 weight
    m_fn = mats_ref[_MFN]                        # segment mean-bcast (over D)
    m_h = mats_ref[_MH]                          # segment mean-bcast (over H)
    m_tail = mats_ref[_MTAIL]                    # fused LN2 + v_out matrix

    fn_g = vec_ref[_FN_G:_FN_G + 1, :]
    fn_b = vec_ref[_FN_B:_FN_B + 1, :]
    b1 = vec_ref[_B1:_B1 + 1, :]
    g1 = vec_ref[_G1:_G1 + 1, :]
    be1 = vec_ref[_BE1:_BE1 + 1, :]
    b2 = vec_ref[_B2:_B2 + 1, :]
    c_v = vec_ref[_CV:_CV + 1, 0:p]              # (1, P): sum(be2*wv) + bv

    # feature_norm: per-segment LayerNorm over the first D lanes.  Segment
    # mean / mean-of-squares are matmuls against block-averaging matrices, so
    # both the reduce AND the broadcast back across the segment run on the
    # otherwise-idle MXU instead of the XLU.
    mu0 = mm(x, m_fn)
    ms0 = mm(x * x, m_fn)
    var0 = jnp.maximum(ms0 - mu0 * mu0, 0.0)     # clamp one-pass cancellation
    xn = (x - mu0) * jax.lax.rsqrt(var0 + eps) * fn_g + fn_b

    # fc1: Linear -> ReLU -> LayerNorm (per segment).
    h1 = jnp.maximum(mm(xn, w1) + b1, 0.0)
    mu1 = mm(h1, m_h)
    ms1 = mm(h1 * h1, m_h)
    var1 = jnp.maximum(ms1 - mu1 * mu1, 0.0)
    h1n = (h1 - mu1) * jax.lax.rsqrt(var1 + eps) * g1 + be1

    # fc2: Linear -> ReLU.  LN2 + v_out are fused:
    #   v = istd2 * (h2 . (g2*wv) - mu2 * sum(g2*wv)) + (sum(be2*wv) + bv)
    # m_tail col q   (q < P): 1/H compact-mean selector of segment q -> mu2
    # m_tail col P+q (q < P): (g2*wv - S/H) of segment q -> the numerator
    h2 = jnp.maximum(mm(h1n, w2) + b2, 0.0)
    stats = mm(h2, m_tail)                       # (TRp, 128)
    ms2 = mm(h2 * h2, m_tail)                    # only cols [0, P) are used
    mu2 = stats[:, 0:p]
    vnum = stats[:, p:2 * p]
    var2 = jnp.maximum(ms2[:, 0:p] - mu2 * mu2, 0.0)
    out_ref[...] = vnum * jax.lax.rsqrt(var2 + eps) + c_v


@functools.partial(jax.jit, static_argnames=("seg", "block_rows"))
def happo_critic_forward(state, mats, vec, *, seg, block_rows=4096):
    """state: [bs, max_t, state_dim] f32.  Returns values: [bs, max_t, 1] f32.

    block_rows = logical rows per grid tile; sweep per generation
    (~2048 on v5e, 4096-8192 on v6e, <=4096 on v7x).
    """
    bs, max_t, d = state.shape
    assert 128 % seg == 0 and d <= seg
    p = 128 // seg                               # logical rows per packed row
    r = bs * max_t
    rp = _cdiv(r, p)                             # packed rows needed

    # Tile sizing: always an even number (>=2) of tiles so v7x's second
    # TensorCore gets work on the 'parallel' axis, capped by block_rows.
    trp_cap = max(8, (block_rows // p) // 8 * 8)
    num_tiles = max(2, 2 * _cdiv(rp, 2 * trp_cap))
    trp = _round_up(_cdiv(rp, num_tiles), 8)
    rp_pad = trp * num_tiles

    # One fused pad+reshape builds the lane-packed layout (D -> seg lanes per
    # logical row, p rows per 128-lane packed row) and the row padding in a
    # single pass over x (replaces the previous separate row-pad copy).
    x = state.reshape(r, d).astype(jnp.float32)
    x = jnp.pad(x, ((0, rp_pad * p - r), (0, seg - d))).reshape(rp_pad, 128)

    cost = pl.CostEstimate(
        flops=2 * 8 * rp_pad * 128 * 128,
        transcendentals=rp_pad * (2 * 128 + p),
        bytes_accessed=4 * (rp_pad * (128 + p) + mats.size + vec.size),
    )

    out = pl.pallas_call(
        functools.partial(happo_critic_kernel, n_seg=p),
        out_shape=jax.ShapeDtypeStruct((rp_pad, p), jnp.float32),
        grid=(num_tiles,),
        in_specs=[
            pl.BlockSpec((trp, 128), lambda i: (i, 0)),     # pipelined x tiles
            pl.BlockSpec(mats.shape, lambda i: (0, 0, 0)),  # resident matrices
            pl.BlockSpec(vec.shape, lambda i: (0, 0)),      # resident vectors
        ],
        out_specs=pl.BlockSpec((trp, p), lambda i: (i, 0)),
        compiler_params=pltpu.CompilerParams(
            dimension_semantics=("parallel",),
            vmem_limit_bytes=32 * 1024 * 1024,
        ),
        cost_estimate=cost,
    )(x, mats, vec)

    # n_agents == 1; PyTorch squeezes before v_out and returns (bs, max_t, 1).
    return out.reshape(-1)[:r].reshape(bs, max_t, 1)


def make_params(key, state_dim, hidden_dim, randomize=False):
    """Raw params mirroring the module (linear weights stored as [in, out]).

    randomize=True perturbs the LayerNorm affines / biases (validation only)
    so every packed / fused parameter path of the kernel is exercised.
    """
    gain = 2.0 ** 0.5  # nn.init.calculate_gain('relu')

    def xavier(k, shape):
        fan_in, fan_out = shape
        a = gain * (6.0 / (fan_in + fan_out)) ** 0.5
        return jax.random.uniform(k, shape, jnp.float32, -a, a)

    d, h = state_dim, hidden_dim
    ks = jax.random.split(key, 12)
    bound = 1.0 / (h ** 0.5)                     # nn.Linear default init
    raw = {
        "fn_g": jnp.ones((d,), jnp.float32),
        "fn_b": jnp.zeros((d,), jnp.float32),
        "w1": xavier(ks[0], (d, h)),
        "b1": jnp.zeros((h,), jnp.float32),
        "g1": jnp.ones((h,), jnp.float32),
        "be1": jnp.zeros((h,), jnp.float32),
        "w2": xavier(ks[1], (h, h)),
        "b2": jnp.zeros((h,), jnp.float32),
        "g2": jnp.ones((h,), jnp.float32),
        "be2": jnp.zeros((h,), jnp.float32),
        "wv": jax.random.uniform(ks[2], (h, 1), jnp.float32, -bound, bound),
        "bv": jax.random.uniform(ks[3], (1,), jnp.float32, -bound, bound),
    }
    if randomize:
        raw["fn_g"] = 1.0 + 0.3 * jax.random.normal(ks[4], (d,), jnp.float32)
        raw["fn_b"] = 0.2 * jax.random.normal(ks[5], (d,), jnp.float32)
        raw["b1"] = 0.1 * jax.random.normal(ks[6], (h,), jnp.float32)
        raw["g1"] = 1.0 + 0.3 * jax.random.normal(ks[7], (h,), jnp.float32)
        raw["be1"] = 0.2 * jax.random.normal(ks[8], (h,), jnp.float32)
        raw["b2"] = 0.1 * jax.random.normal(ks[9], (h,), jnp.float32)
        raw["g2"] = 1.0 + 0.3 * jax.random.normal(ks[10], (h,), jnp.float32)
        raw["be2"] = 0.2 * jax.random.normal(ks[11], (h,), jnp.float32)
    return raw


def pack_params(raw, state_dim, hidden_dim):
    """Build the lane-packed kernel operands.  Returns (mats, vec, seg)."""
    d, h = state_dim, hidden_dim
    assert max(d, h) <= 128, "packing assumes state_dim, hidden_dim <= 128"
    seg = max(8, 1 << (max(d, h) - 1).bit_length())   # pow2, divides 128
    n_seg = 128 // seg

    w1 = np.asarray(raw["w1"], np.float32)
    w2 = np.asarray(raw["w2"], np.float32)
    wv = np.asarray(raw["wv"], np.float32)[:, 0]
    g2 = np.asarray(raw["g2"], np.float32)
    be2 = np.asarray(raw["be2"], np.float32)
    bv = float(np.asarray(raw["bv"], np.float32)[0])

    wvf = g2 * wv                                 # LN2 gamma folded into v_out
    s_wvf = float(wvf.sum())
    c_v = float((be2 * wv).sum()) + bv            # LN2 beta + v_out bias

    mats = np.zeros((5, 128, 128), np.float32)
    vec = np.zeros((8, 128), np.float32)
    for q in range(n_seg):
        o = q * seg
        mats[_W1, o:o + d, o:o + h] = w1
        mats[_W2, o:o + h, o:o + h] = w2
        mats[_MFN, o:o + d, o:o + seg] = 1.0 / d
        mats[_MH, o:o + h, o:o + seg] = 1.0 / h
        mats[_MTAIL, o:o + h, q] = 1.0 / h
        mats[_MTAIL, o:o + h, n_seg + q] = wvf - s_wvf / h
        vec[_FN_G, o:o + d] = np.asarray(raw["fn_g"], np.float32)
        vec[_FN_B, o:o + d] = np.asarray(raw["fn_b"], np.float32)
        vec[_B1, o:o + h] = np.asarray(raw["b1"], np.float32)
        vec[_G1, o:o + h] = np.asarray(raw["g1"], np.float32)
        vec[_BE1, o:o + h] = np.asarray(raw["be1"], np.float32)
        vec[_B2, o:o + h] = np.asarray(raw["b2"], np.float32)
    vec[_CV, :] = c_v
    return jnp.asarray(mats), jnp.asarray(vec), seg


def happo_critic_reference(state, raw):
    """Pure-JAX reference of the same forward pass (validation only)."""
    hi = jax.lax.Precision.HIGHEST

    def ln(x, g, b, eps=1e-5):
        mu = jnp.mean(x, axis=-1, keepdims=True)
        var = jnp.mean((x - mu) ** 2, axis=-1, keepdims=True)
        return (x - mu) * jax.lax.rsqrt(var + eps) * g + b

    bs, max_t, d = state.shape
    x = state.reshape(bs * max_t, d)
    x = ln(x, raw["fn_g"], raw["fn_b"])
    h = jnp.maximum(jnp.dot(x, raw["w1"], precision=hi) + raw["b1"], 0.0)
    h = ln(h, raw["g1"], raw["be1"])
    h = jnp.maximum(jnp.dot(h, raw["w2"], precision=hi) + raw["b2"], 0.0)
    h = ln(h, raw["g2"], raw["be2"])
    v = jnp.dot(h, raw["wv"], precision=hi) + raw["bv"]
    return v.reshape(bs, max_t, 1)


if __name__ == "__main__":
    bs, max_t = 2, 8          # batch_size, max_seq_length
    state_dim = 24            # scheme['state']['vshape']
    hidden_dim = 32           # args.hidden_dim

    key = jax.random.PRNGKey(0)
    k_state, k_p1, k_p2 = jax.random.split(key, 3)
    state = jax.random.normal(k_state, (bs, max_t, state_dim), jnp.float32)

    # 1) Module-faithful init (LN gamma=1 / beta=0, zero fc biases).
    raw = make_params(k_p1, state_dim, hidden_dim)
    mats, vec, seg = pack_params(raw, state_dim, hidden_dim)
    values = happo_critic_forward(state, mats, vec, seg=seg)
    jax.block_until_ready(values)
    assert values.shape == (bs, max_t, 1)
    err = float(jnp.max(jnp.abs(values - happo_critic_reference(state, raw))))
    assert err < 1e-4, f"kernel/reference mismatch (faithful init): {err}"

    # 2) Randomized affines/biases: exercises every packed + fused term.
    raw2 = make_params(k_p2, state_dim, hidden_dim, randomize=True)
    mats2, vec2, seg2 = pack_params(raw2, state_dim, hidden_dim)
    values2 = happo_critic_forward(state, mats2, vec2, seg=seg2)
    jax.block_until_ready(values2)
    err2 = float(
        jnp.max(jnp.abs(values2 - happo_critic_reference(state, raw2))))
    assert err2 < 1e-4, f"kernel/reference mismatch (randomized): {err2}"

    print("KERNEL_OK")
</pallas_src>

<mosaic_0001>
module attributes {stable_mosaic.version = 11 : i64} {
  func.func @happo_critic_kernel(%arg0: i32, %arg1: memref<8x128xf32, #tpu.memory_space<vmem>>, %arg2: memref<5x128x128xf32, #tpu.memory_space<vmem>>, %arg3: memref<8x128xf32, #tpu.memory_space<vmem>>, %arg4: memref<8x4xf32, #tpu.memory_space<vmem>>) attributes {dimension_semantics = [#tpu.dimension_semantics<parallel>], iteration_bounds = array<i64: 2>, scalar_prefetch = 0 : i64, scratch_operands = 0 : i64, tpu.core_type = #tpu.core_type<tc>, window_params = [{transform_indices = @transform_0, window_bounds = array<i64: 8, 128>}, {pipeline_mode = #tpu.pipeline_mode<synchronous>, transform_indices = @transform_1, window_bounds = array<i64: 5, 128, 128>}, {pipeline_mode = #tpu.pipeline_mode<synchronous>, transform_indices = @transform_2, window_bounds = array<i64: 8, 128>}, {transform_indices = @transform_3, window_bounds = array<i64: 8, 4>}]} {
    %c0 = arith.constant 0 : index
    %c0_0 = arith.constant 0 : index
    %0 = vector.load %arg1[%c0, %c0_0] : memref<8x128xf32, #tpu.memory_space<vmem>>, vector<8x128xf32>
    %c0_1 = arith.constant 0 : index
    %c0_2 = arith.constant 0 : index
    %c0_3 = arith.constant 0 : index
    %1 = vector.load %arg2[%c0_1, %c0_2, %c0_3] : memref<5x128x128xf32, #tpu.memory_space<vmem>>, vector<1x128x128xf32>
    %2 = vector.shape_cast %1 : vector<1x128x128xf32> to vector<128x128xf32>
    %c1 = arith.constant 1 : index
    %c0_4 = arith.constant 0 : index
    %c0_5 = arith.constant 0 : index
    %3 = vector.load %arg2[%c1, %c0_4, %c0_5] : memref<5x128x128xf32, #tpu.memory_space<vmem>>, vector<1x128x128xf32>
    %4 = vector.shape_cast %3 : vector<1x128x128xf32> to vector<128x128xf32>
    %c2 = arith.constant 2 : index
    %c0_6 = arith.constant 0 : index
    %c0_7 = arith.constant 0 : index
    %5 = vector.load %arg2[%c2, %c0_6, %c0_7] : memref<5x128x128xf32, #tpu.memory_space<vmem>>, vector<1x128x128xf32>
    %6 = vector.shape_cast %5 : vector<1x128x128xf32> to vector<128x128xf32>
    %c3 = arith.constant 3 : index
    %c0_8 = arith.constant 0 : index
    %c0_9 = arith.constant 0 : index
    %7 = vector.load %arg2[%c3, %c0_8, %c0_9] : memref<5x128x128xf32, #tpu.memory_space<vmem>>, vector<1x128x128xf32>
    %8 = vector.shape_cast %7 : vector<1x128x128xf32> to vector<128x128xf32>
    %c4 = arith.constant 4 : index
    %c0_10 = arith.constant 0 : index
    %c0_11 = arith.constant 0 : index
    %9 = vector.load %arg2[%c4, %c0_10, %c0_11] : memref<5x128x128xf32, #tpu.memory_space<vmem>>, vector<1x128x128xf32>
    %10 = vector.shape_cast %9 : vector<1x128x128xf32> to vector<128x128xf32>
    %c0_12 = arith.constant 0 : index
    %c0_13 = arith.constant 0 : index
    %11 = vector.load %arg3[%c0_12, %c0_13] : memref<8x128xf32, #tpu.memory_space<vmem>>, vector<1x128xf32>
    %c1_14 = arith.constant 1 : index
    %c0_15 = arith.constant 0 : index
    %12 = vector.load %arg3[%c1_14, %c0_15] : memref<8x128xf32, #tpu.memory_space<vmem>>, vector<1x128xf32>
    %c2_16 = arith.constant 2 : index
    %c0_17 = arith.constant 0 : index
    %13 = vector.load %arg3[%c2_16, %c0_17] : memref<8x128xf32, #tpu.memory_space<vmem>>, vector<1x128xf32>
    %c3_18 = arith.constant 3 : index
    %c0_19 = arith.constant 0 : index
    %14 = vector.load %arg3[%c3_18, %c0_19] : memref<8x128xf32, #tpu.memory_space<vmem>>, vector<1x128xf32>
    %c4_20 = arith.constant 4 : index
    %c0_21 = arith.constant 0 : index
    %15 = vector.load %arg3[%c4_20, %c0_21] : memref<8x128xf32, #tpu.memory_space<vmem>>, vector<1x128xf32>
    %c5 = arith.constant 5 : index
    %c0_22 = arith.constant 0 : index
    %16 = vector.load %arg3[%c5, %c0_22] : memref<8x128xf32, #tpu.memory_space<vmem>>, vector<1x128xf32>
    %c6 = arith.constant 6 : index
    %c0_23 = arith.constant 0 : index
    %17 = vector.load %arg3[%c6, %c0_23] : memref<8x128xf32, #tpu.memory_space<vmem>>, vector<1x4xf32>
    %cst = arith.constant dense<0.000000e+00> : vector<8x128xf32>
    %18 = tpu.matmul %0, %6, %cst {dimension_numbers = #tpu.dot_dimension_numbers<[1], [0], [0], [1], [0, 0, 1, 1], [], []>, precision = #tpu.contract_precision<fp32>} : vector<8x128xf32>, vector<128x128xf32>, vector<8x128xf32> -> vector<8x128xf32>
    %19 = arith.mulf %0, %0 : vector<8x128xf32>
    %cst_24 = arith.constant dense<0.000000e+00> : vector<8x128xf32>
    %20 = tpu.matmul %19, %6, %cst_24 {dimension_numbers = #tpu.dot_dimension_numbers<[1], [0], [0], [1], [0, 0, 1, 1], [], []>, precision = #tpu.contract_precision<fp32>} : vector<8x128xf32>, vector<128x128xf32>, vector<8x128xf32> -> vector<8x128xf32>
    %21 = arith.mulf %18, %18 : vector<8x128xf32>
    %22 = arith.subf %20, %21 : vector<8x128xf32>
    %cst_25 = arith.constant 0.000000e+00 : f32
    %23 = vector.broadcast %cst_25 : f32 to vector<8x128xf32>
    %24 = arith.maximumf %22, %23 : vector<8x128xf32>
    %25 = arith.subf %0, %18 : vector<8x128xf32>
    %cst_26 = arith.constant 9.99999974E-6 : f32
    %26 = vector.broadcast %cst_26 : f32 to vector<8x128xf32>
    %27 = arith.addf %24, %26 : vector<8x128xf32>
    %28 = math.rsqrt %27 : vector<8x128xf32>
    %29 = arith.mulf %25, %28 : vector<8x128xf32>
    %30 = vector.broadcast %11 : vector<1x128xf32> to vector<8x128xf32>
    %31 = arith.mulf %29, %30 : vector<8x128xf32>
    %32 = vector.broadcast %12 : vector<1x128xf32> to vector<8x128xf32>
    %33 = arith.addf %31, %32 : vector<8x128xf32>
    %cst_27 = arith.constant dense<0.000000e+00> : vector<8x128xf32>
    %34 = tpu.matmul %33, %2, %cst_27 {dimension_numbers = #tpu.dot_dimension_numbers<[1], [0], [0], [1], [0, 0, 1, 1], [], []>, precision = #tpu.contract_precision<fp32>} : vector<8x128xf32>, vector<128x128xf32>, vector<8x128xf32> -> vector<8x128xf32>
    %35 = vector.broadcast %13 : vector<1x128xf32> to vector<8x128xf32>
    %36 = arith.addf %34, %35 : vector<8x128xf32>
    %cst_28 = arith.constant 0.000000e+00 : f32
    %37 = vector.broadcast %cst_28 : f32 to vector<8x128xf32>
    %38 = arith.maximumf %36, %37 : vector<8x128xf32>
    %cst_29 = arith.constant dense<0.000000e+00> : vector<8x128xf32>
    %39 = tpu.matmul %38, %8, %cst_29 {dimension_numbers = #tpu.dot_dimension_numbers<[1], [0], [0], [1], [0, 0, 1, 1], [], []>, precision = #tpu.contract_precision<fp32>} : vector<8x128xf32>, vector<128x128xf32>, vector<8x128xf32> -> vector<8x128xf32>
    %40 = arith.mulf %38, %38 : vector<8x128xf32>
    %cst_30 = arith.constant dense<0.000000e+00> : vector<8x128xf32>
    %41 = tpu.matmul %40, %8, %cst_30 {dimension_numbers = #tpu.dot_dimension_numbers<[1], [0], [0], [1], [0, 0, 1, 1], [], []>, precision = #tpu.contract_precision<fp32>} : vector<8x128xf32>, vector<128x128xf32>, vector<8x128xf32> -> vector<8x128xf32>
    %42 = arith.mulf %39, %39 : vector<8x128xf32>
    %43 = arith.subf %41, %42 : vector<8x128xf32>
    %cst_31 = arith.constant 0.000000e+00 : f32
    %44 = vector.broadcast %cst_31 : f32 to vector<8x128xf32>
    %45 = arith.maximumf %43, %44 : vector<8x128xf32>
    %46 = arith.subf %38, %39 : vector<8x128xf32>
    %cst_32 = arith.constant 9.99999974E-6 : f32
    %47 = vector.broadcast %cst_32 : f32 to vector<8x128xf32>
    %48 = arith.addf %45, %47 : vector<8x128xf32>
    %49 = math.rsqrt %48 : vector<8x128xf32>
    %50 = arith.mulf %46, %49 : vector<8x128xf32>
    %51 = vector.broadcast %14 : vector<1x128xf32> to vector<8x128xf32>
    %52 = arith.mulf %50, %51 : vector<8x128xf32>
    %53 = vector.broadcast %15 : vector<1x128xf32> to vector<8x128xf32>
    %54 = arith.addf %52, %53 : vector<8x128xf32>
    %cst_33 = arith.constant dense<0.000000e+00> : vector<8x128xf32>
    %55 = tpu.matmul %54, %4, %cst_33 {dimension_numbers = #tpu.dot_dimension_numbers<[1], [0], [0], [1], [0, 0, 1, 1], [], []>, precision = #tpu.contract_precision<fp32>} : vector<8x128xf32>, vector<128x128xf32>, vector<8x128xf32> -> vector<8x128xf32>
    %56 = vector.broadcast %16 : vector<1x128xf32> to vector<8x128xf32>
    %57 = arith.addf %55, %56 : vector<8x128xf32>
    %cst_34 = arith.constant 0.000000e+00 : f32
    %58 = vector.broadcast %cst_34 : f32 to vector<8x128xf32>
    %59 = arith.maximumf %57, %58 : vector<8x128xf32>
    %cst_35 = arith.constant dense<0.000000e+00> : vector<8x128xf32>
    %60 = tpu.matmul %59, %10, %cst_35 {dimension_numbers = #tpu.dot_dimension_numbers<[1], [0], [0], [1], [0, 0, 1, 1], [], []>, precision = #tpu.contract_precision<fp32>} : vector<8x128xf32>, vector<128x128xf32>, vector<8x128xf32> -> vector<8x128xf32>
    %61 = arith.mulf %59, %59 : vector<8x128xf32>
    %cst_36 = arith.constant dense<0.000000e+00> : vector<8x128xf32>
    %62 = tpu.matmul %61, %10, %cst_36 {dimension_numbers = #tpu.dot_dimension_numbers<[1], [0], [0], [1], [0, 0, 1, 1], [], []>, precision = #tpu.contract_precision<fp32>} : vector<8x128xf32>, vector<128x128xf32>, vector<8x128xf32> -> vector<8x128xf32>
    %63 = vector.extract_strided_slice %60 {offsets = [0, 0], sizes = [8, 4], strides = [1, 1]} : vector<8x128xf32> to vector<8x4xf32>
    %64 = vector.extract_strided_slice %60 {offsets = [0, 4], sizes = [8, 4], strides = [1, 1]} : vector<8x128xf32> to vector<8x4xf32>
    %65 = vector.extract_strided_slice %62 {offsets = [0, 0], sizes = [8, 4], strides = [1, 1]} : vector<8x128xf32> to vector<8x4xf32>
    %66 = arith.mulf %63, %63 : vector<8x4xf32>
    %67 = arith.subf %65, %66 : vector<8x4xf32>
    %cst_37 = arith.constant 0.000000e+00 : f32
    %68 = vector.broadcast %cst_37 : f32 to vector<8x4xf32>
    %69 = arith.maximumf %67, %68 : vector<8x4xf32>
    %cst_38 = arith.constant 9.99999974E-6 : f32
    %70 = vector.broadcast %cst_38 : f32 to vector<8x4xf32>
    %71 = arith.addf %69, %70 : vector<8x4xf32>
    %72 = math.rsqrt %71 : vector<8x4xf32>
    %73 = arith.mulf %64, %72 : vector<8x4xf32>
    %74 = vector.broadcast %17 : vector<1x4xf32> to vector<8x4xf32>
    %75 = arith.addf %73, %74 : vector<8x4xf32>
    %c0_39 = arith.constant 0 : index
    %c0_40 = arith.constant 0 : index
    %76 = vector.load %arg4[%c0_39, %c0_40] : memref<8x4xf32, #tpu.memory_space<vmem>>, vector<8x4xf32>
    tpu.vector_store %arg4[%c0_39, %c0_40], %75 {strides = array<i32>} : memref<8x4xf32, #tpu.memory_space<vmem>>, vector<8x4xf32>,
    return
  }
  func.func @transform_0(%arg0: i32) -> (i32, i32) {
    %c0_i32 = arith.constant 0 : i32
    %c0_i32_0 = arith.constant 0 : i32
    return %arg0, %c0_i32 : i32, i32
  }
  func.func @transform_1(%arg0: i32) -> (i32, i32, i32) {
    %c0_i32 = arith.constant 0 : i32
    %c0_i32_0 = arith.constant 0 : i32
    %c0_i32_1 = arith.constant 0 : i32
    %c0_i32_2 = arith.constant 0 : i32
    return %c0_i32, %c0_i32_0, %c0_i32_1 : i32, i32, i32
  }
  func.func @transform_2(%arg0: i32) -> (i32, i32) {
    %c0_i32 = arith.constant 0 : i32
    %c0_i32_0 = arith.constant 0 : i32
    %c0_i32_1 = arith.constant 0 : i32
    return %c0_i32, %c0_i32_0 : i32, i32
  }
  func.func @transform_3(%arg0: i32) -> (i32, i32) {
    %c0_i32 = arith.constant 0 : i32
    %c0_i32_0 = arith.constant 0 : i32
    return %arg0, %c0_i32 : i32, i32
  }
}

</mosaic_0001>

<bundles_post_ra>
// kernel: happo_critic_forward.1
= control target key start
LH: loop header
LB: loop body
LE: loop exit
PB: predicated region body
PF: predicated region fallthrough
CT: control target
= control target key end

     0   :  { %8 = vsyncpa [#allocation3], 0  ;;  %s9386_s12 = smov 0   ;;  %s11339_s0 = inlined_call_operand.vmem [shape: f32[16,128], index: 0, kind: input, shape index: {}]   ;;  %s11340_s1 = inlined_call_operand.hbm [shape: f32[5,128,128], index: 1, kind: input, shape index: {}]   ;;  %s11341_s2 = inlined_call_operand.vmem [shape: f32[8,128], index: 2, kind: input, shape index: {}]   ;;  %s11342_s3 = inlined_call_operand.vmem [shape: f32[16,4], index: 3, kind: output, shape index: {}]  }
   0x1 LB: > { %s9392_s13 = sadd.s32 4294967295, %s9356_s12   ;;  %p5540_p0 = scmp.ge.s32.totalorder %s9356_s12, 1  ;;  %s9356_s12 = sphi %s9386_s12, %s14_s12  }
   0x2   : > { %p113_p1 = scmp.lt.s32.totalorder %s9356_s12, 3  ;;  %s9358_s14 = smov [#allocation2]  }
   0x3   : > { %s125_s15 = sshll.u32 %s9358_s14, 4  ;;  %p11343_p3 = scmp.eq.s32.totalorder %s9392_s13, 0  ;;  %s126_s15 = int_to_ptr.vmem [resolvable:$true] %s125_s15 }
   0x4   : > { %p9396_p2 = pnand %p5540_p0, %p113_p1  ;;  %s9318_s20 = scalar_lea.hbm %s11340_s1, 10240 }
   0x5   : > { %p9319_p6 = scmp.ne.s32.totalorder %s11340_s1, %s9318_s20  ;;  %p9325_p10 = scmp.lt.u32.totalorder %s9318_s20, %s11340_s1 }
   0x6   : > { %s11377_s16 = scalar_select %p9396_p2, 1, 0 }
   0x7   : > { %p9290_p4 = pneg %p9396_p2 }
   0x9   : > { %p9405_p5 = pnand %p11343_p3, %p9290_p4 }
   0xb   : > { %p9320_p7 = pneg %p9405_p5 }
   0xd   : > { %p9321_p8 = pnand %p9320_p7, %p9319_p6 }
   0xf   : > { %p9322_p9 = pneg %p9321_p8 }
  0x11   : > { %p9327_p11 = pnand %p9325_p10, %p9322_p9 }
  0x13   : > { %9330 = shalt.err (!%p9327_p11)
}
  0x14   : > { %s9331_s25 = scalar_lea.vmem %s126_s15, 10240  ;;  %p9339_p1 = scmp.lt.s32.totalorder %s126_s15, %s126_s15 }
  0x15   : > { %p9332_p12 = scmp.ne.s32.totalorder %s126_s15, %s9331_s25  ;;  %p9340_p4 = scmp.lt.s32.totalorder %s9331_s25, %s9331_s25 }
  0x17   : > { %p9334_p13 = pnand %p9332_p12, %p9320_p7  ;;  %p9341_p3 = por %p9340_p4, %p9339_p1 }
  0x19   : > { %p9335_p0 = pneg %p9334_p13 }
  0x1b   : > { %p9342_p2 = pnand %p9341_p3, %p9335_p0 }
  0x1d   : > { %9345 = shalt.err (!%p9342_p2)
}
  0x1e   : > { %s9359_s26 = smov 128   ;;  %s9360_s27 = smov 8  }
  0x1f   : > { %9293 = dma.hbm_to_vmem [thread:$0]  (!%p9405_p5), %s11340_s1, 10240, %s126_s15, [#allocation3], %s9359_s26, %s9359_s26, %s9360_s27  }
  0x20   : > { %p11379_p6 = scmp.ne.s32.totalorder %s11377_s16, 0 }
  0x21   : > { %p11380_p8 = scmp.eq.s32.totalorder (!%p11379_p6), %s9392_s13, 0 }
  0x22   : > { %151 = sbr.rel (%p11379_p6) target bundleno = 2292 (0x8f4), region = 32 }
  0x29   : > { %9351 = dma.done.wait (%p11380_p8), [#allocation3], 10240   ;;  %p11381_p7 = pmov %p11380_p8 }
  0x2a   : > { %v9361_v0 = vmov 0.0|0.0   ;;  %p173_p2 = scmp.lt.s32.totalorder %s9392_s13, 1  ;;  %vm9362_vm0 = vmmov 0   ;;  %v9363_v1 = vmov 0.0   ;;  %v216_v2 = vld [vmem:[#allocation2 + $0x100] sm:$0xff]  ;;  %v217_v3 = vld [vmem:[#allocation2 + $0x108] sm:$0xff] }
  0x2b   : > { %9353 = vsyncadd (%p11381_p7), [#allocation3], 4294957056  ;;  %8052 = vmatprep.subr.bf16.mxu0 %v9361_v0  ;;  %8196 = vmatprep.subr.bf16.mxu1 %v9361_v0  ;;  %v218_v4 = vld [vmem:[#allocation2 + $0x110] sm:$0xff]  ;;  %v274_v5 = vand.u32 4294901760, %v216_v2  ;;  %v277_v6 = vand.u32 4294901760, %v217_v3  ;;  %v219_v7 = vld [vmem:[#allocation2 + $0x118] sm:$0xff] }
  0x2c   : > { %6404 = vmatprep.mubr.msk.f32.mxu0 %vm9362_vm0, %v9363_v1  ;;  %6614 = vmatprep.mubr.msk.f32.mxu1 %vm9362_vm0, %v9363_v1  ;;  %s11415_s13 = smov (!%p173_p2, %s9392_s13), 1  ;;  %v280_v8 = vand.u32 4294901760, %v218_v4  ;;  %v283_v9 = vand.u32 4294901760, %v219_v7  ;;  %v9441_v10 = vld [vmem:[#allocation2 + $0x120] sm:$0xff]  ;;  %v9443_v11 = vld [vmem:[#allocation2 + $0x128] sm:$0xff]  ;;  %v9461_v16 = vld [vmem:[#allocation2 + $0x130] sm:$0xff] }
  0x2d   : > { %s5545_s30 = sshll.u32 %s11415_s13, 3  ;;  %v9446_v12 = vpack.c.bf16 %v277_v6, %v274_v5  ;;  %v286_v14 = vand.u32 4294901760, %v9441_v10  ;;  %v289_v15 = vand.u32 4294901760, %v9443_v11  ;;  %v9463_v17 = vld [vmem:[#allocation2 + $0x138] sm:$0xff]  ;;  %v292_v20 = vand.u32 4294901760, %v9461_v16  ;;  %v224_v22 = vld [vmem:[#allocation2 + $0x140] sm:$0xff] }
  0x2e   : > { %v9450_v13 = vpack.c.bf16 %v283_v9, %v280_v8  ;;  %s176_s6 = scalar_lea.vmem %s11339_s0, %s5545_s30  ;;  %v295_v21 = vand.u32 4294901760, %v9463_v17  ;;  %v225_v23 = vld [vmem:[#allocation2 + $0x148] sm:$0xff]  ;;  %v226_v26 = vld [vmem:[#allocation2 + $0x150] sm:$0xff]  ;;  %v227_v27 = vld [vmem:[#allocation2 + $0x158] sm:$0xff]  ;;  %v298_v30 = vand.u32 4294901760, %v224_v22  ;;  %v9484_v35 = vsub.f32 %v216_v2, %v274_v5  ;;  %s9364_s21 = smov 4  }
  0x2f   : > { %8054 = vmatpush3.bf16.msra.mxu0 %v9446_v12  ;;  %8198 = vmatpush3.bf16.msra.mxu1 %v9446_v12  ;;  %v9465_v18 = vld [vmem:[%s176_s6] sm:$0xff]  ;;  %v9469_v19 = vpack.c.bf16 %v289_v15, %v286_v14  ;;  %v301_v31 = vand.u32 4294901760, %v225_v23  ;;  %v229_v32 = vld [vmem:[#allocation2 + $0x168] sm:$0xff]  ;;  %v230_v33 = vld [vmem:[#allocation2 + $0x170] sm:$0xff]  ;;  %v9492_v37 = vsub.f32 %v217_v3, %v277_v6  ;;  %v9494_v38 = vsub.f32 %v218_v4, %v280_v8  ;;  %s9365_s24 = smov 124   ;;  %s180_s27 = scalar_lea.vmem %s11342_s3, %s5545_s30 }
  0x30   : > { %8055 = vmatprep.subr.bf16.mxu0 %v9361_v0  ;;  %8199 = vmatprep.subr.bf16.mxu1 %v9361_v0  ;;  %v9476_v24 = vand.u32 4294901760, %v9465_v18  ;;  %v914_v25 = vmul.f32 %v9465_v18, %v9465_v18  ;;  %v228_v28 = vld [vmem:[#allocation2 + $0x160] sm:$0xff]  ;;  %v9482_v29 = vpack.c.bf16 %v295_v21, %v292_v20  ;;  %v231_v34 = vld [vmem:[#allocation2 + $0x178] sm:$0xff]  ;;  %v304_v39 = vand.u32 4294901760, %v226_v26 }
  0x31   : > { %v307_v40 = vand.u32 4294901760, %v227_v27  ;;  %v310_v42 = vand.u32 4294901760, %v228_v28  ;;  %v313_v43 = vand.u32 4294901760, %v229_v32  ;;  %v316_v44 = vand.u32 4294901760, %v230_v33 }
  0x32   : > { %v9490_v36 = vsub.f32 %v9465_v18, %v9476_v24  ;;  %v9496_v41 = vand.u32 4294901760, %v914_v25  ;;  %v319_v45 = vand.u32 4294901760, %v231_v34  ;;  %v9500_v46 = vpack.c.bf16 %v301_v31, %v298_v30 }
  0x33   : > { %8057 = vmatpush3.bf16.msra.mxu0 %v9450_v13  ;;  %8201 = vmatpush3.bf16.msra.mxu1 %v9450_v13  ;;  %v367_v47 = vand.u32 4294901760, %v9484_v35  ;;  %v374_v49 = vand.u32 4294901760, %v9492_v37  ;;  %v381_v50 = vand.u32 4294901760, %v9494_v38  ;;  %v9508_v51 = vsub.f32 %v219_v7, %v283_v9 }
  0x34   : > { %8058 = vmatprep.subr.bf16.mxu0 %v9361_v0  ;;  %8202 = vmatprep.subr.bf16.mxu1 %v9361_v0  ;;  %v11346_v48 = vand.u32 4294901760, %v9490_v36  ;;  %v9511_v52 = vsub.f32 %v914_v25, %v9496_v41  ;;  %v9513_v53 = vpack.c.bf16 %v307_v40, %v304_v39  ;;  %v9515_v54 = vpack.c.bf16 %v313_v43, %v310_v42 }
  0x35   : > { %v9517_v55 = vpack.c.bf16 %v319_v45, %v316_v44  ;;  %v368_v56 = vsub.f32 %v9484_v35, %v367_v47  ;;  %v9523_v57 = vsub.f32 %v9441_v10, %v286_v14  ;;  %v9526_v58 = vsub.f32 %v9443_v11, %v289_v15 }
  0x36   : > { %v357_v59 = vsub.f32 %v9490_v36, %v11346_v48  ;;  %v375_v60 = vsub.f32 %v9492_v37, %v374_v49  ;;  %v9535_v61 = vsub.f32 %v9494_v38, %v381_v50  ;;  %v388_v62 = vand.u32 4294901760, %v9508_v51 }
  0x37   : > { %8060 = vmatpush3.bf16.msra.mxu0 %v9469_v19  ;;  %8204 = vmatpush3.bf16.msra.mxu1 %v9469_v19  ;;  %v11345_v63 = vand.u32 4294901760, %v9511_v52  ;;  %v9540_v2 = vsub.f32 %v9461_v16, %v292_v20  ;;  %v9543_v3 = vsub.f32 %v9463_v17, %v295_v21  ;;  %v9545_v4 = vsub.f32 %v224_v22, %v298_v30 }
  0x38   : > { %8061 = vmatprep.subr.bf16.mxu0 %v9361_v0  ;;  %8205 = vmatprep.subr.bf16.mxu1 %v9361_v0  ;;  %v9547_v5 = vsub.f32 %v225_v23, %v301_v31  ;;  %v9549_v6 = vsub.f32 %v226_v26, %v304_v39  ;;  %v9551_v7 = vsub.f32 %v227_v27, %v307_v40  ;;  %v395_v9 = vand.u32 4294901760, %v9523_v57 }
  0x39   : > { %v9553_v8 = vsub.f32 %v228_v28, %v310_v42  ;;  %v9558_v10 = vsub.f32 %v229_v32, %v313_v43  ;;  %v9560_v11 = vsub.f32 %v230_v33, %v316_v44  ;;  %v9562_v14 = vsub.f32 %v231_v34, %v319_v45 }
  0x3a   : > { %v369_v15 = vand.u32 4294901760, %v368_v56  ;;  %v376_v16 = vand.u32 4294901760, %v375_v60  ;;  %v389_v17 = vsub.f32 %v9508_v51, %v388_v62  ;;  %v402_v20 = vand.u32 4294901760, %v9526_v58 }
  0x3b   : > { %8063 = vmatpush3.bf16.msra.mxu0 %v9482_v29  ;;  %8207 = vmatpush3.bf16.msra.mxu1 %v9482_v29  ;;  %v999_v21 = vsub.f32 %v9511_v52, %v11345_v63  ;;  %v409_v22 = vand.u32 4294901760, %v9540_v2  ;;  %v416_v23 = vand.u32 4294901760, %v9543_v3  ;;  %v423_v25 = vand.u32 4294901760, %v9545_v4 }
  0x3c   : > { %8064 = vmatprep.subr.bf16.mxu0 %v9361_v0  ;;  %8208 = vmatprep.subr.bf16.mxu1 %v9361_v0  ;;  %v430_v26 = vand.u32 4294901760, %v9547_v5  ;;  %v437_v27 = vand.u32 4294901760, %v9549_v6  ;;  %v444_v28 = vand.u32 4294901760, %v9551_v7  ;;  %v451_v30 = vand.u32 4294901760, %v9553_v8 }
  0x3d   : > { %v458_v31 = vand.u32 4294901760, %v9558_v10  ;;  %v465_v32 = vand.u32 4294901760, %v9560_v11  ;;  %v11347_v33 = vand.u32 4294901760, %v9562_v14  ;;  %v9583_v34 = vpack.c.bf16 %v374_v49, %v367_v47 }
  0x3e   : > { %v9587_v39 = vpack.c.bf16 %v388_v62, %v381_v50  ;;  %v9589_v40 = vpack.c.bf16 %v402_v20, %v395_v9  ;;  %v9591_v42 = vpack.c.bf16 %v416_v23, %v409_v22  ;;  %v9593_v43 = vpack.c.bf16 %v430_v26, %v423_v25 }
  0x3f   : > { %8066 = vmatpush3.bf16.msra.mxu0 %v9500_v46  ;;  %8210 = vmatpush3.bf16.msra.mxu1 %v9500_v46  ;;  %v9595_v44 = vpack.c.bf16 %v444_v28, %v437_v27  ;;  %v9597_v45 = vpack.c.bf16 %v458_v31, %v451_v30  ;;  %v9603_v47 = vpack.c.bf16 %v11347_v33, %v465_v32  ;;  %v358_v49 = vand.u32 4294901760, %v357_v59 }
  0x40   : > { %8067 = vmatprep.subr.bf16.mxu0 %v9361_v0  ;;  %8211 = vmatprep.subr.bf16.mxu1 %v9361_v0  ;;  %v1000_v56 = vand.u32 4294901760, %v999_v21  ;;  %v396_v50 = vsub.f32 %v9523_v57, %v395_v9  ;;  %v403_v60 = vsub.f32 %v9526_v58, %v402_v20  ;;  %v8077_v62 = vpack.c.bf16 %v376_v16, %v369_v15 }
  0x41   : > { %v383_v63 = vand.u32 4294901760, %v9535_v61  ;;  %v390_v48 = vand.u32 4294901760, %v389_v17  ;;  %v410_v20 = vsub.f32 %v9540_v2, %v409_v22  ;;  %v417_v33 = vsub.f32 %v9543_v3, %v416_v23 }
  0x42   : > { %v397_v59 = vand.u32 4294901760, %v396_v50  ;;  %v404_v21 = vand.u32 4294901760, %v403_v60  ;;  %v438_v17 = vsub.f32 %v9549_v6, %v437_v27  ;;  %v459_v27 = vsub.f32 %v9558_v10, %v458_v31 }
  0x43   : > { %8069 = vmatpush3.bf16.msra.mxu0 %v9513_v53  ;;  %8213 = vmatpush3.bf16.msra.mxu1 %v9513_v53  ;;  %v8080_v9 = vpack.c.bf16 %v390_v48, %v383_v63  ;;  %v411_v15 = vand.u32 4294901760, %v410_v20  ;;  %v418_v16 = vand.u32 4294901760, %v417_v33  ;;  %v424_v48 = vsub.f32 %v9545_v4, %v423_v25 }
  0x44   : > { %8070 = vmatprep.subr.bf16.mxu0 %v9361_v0  ;;  %8214 = vmatprep.subr.bf16.mxu1 %v9361_v0  ;;  %v8083_v61 = vpack.c.bf16 %v404_v21, %v397_v59  ;;  %v431_v63 = vsub.f32 %v9547_v5, %v430_v26  ;;  %v452_v25 = vsub.f32 %v9553_v8, %v451_v30  ;;  %v439_v33 = vand.u32 4294901760, %v438_v17 }
  0x45   : > { %v8086_v22 = vpack.c.bf16 %v418_v16, %v411_v15  ;;  %v425_v23 = vand.u32 4294901760, %v424_v48  ;;  %v466_v30 = vsub.f32 %v9560_v11, %v465_v32  ;;  %v11382_v59 = vand.u32 4294901760, %v9562_v14 }
  0x46   : > { %v453_v60 = vand.u32 4294901760, %v452_v25  ;;  %v8104_v15 = vpack.c.bf16 %v9508_v51, %v9494_v38  ;;  %v8113_v38 = vpack.c.bf16 %v9547_v5, %v9545_v4  ;;  %v8116_v51 = vpack.c.bf16 %v9551_v7, %v9549_v6 }
  0x47   : > { %8072 = vmatpush3.bf16.msra.mxu0 %v9515_v54  ;;  %8216 = vmatpush3.bf16.msra.mxu1 %v9515_v54  ;;  %v473_v21 = vsub.f32 %v9562_v14, %v11382_v59  ;;  %vm5471_vm1 = vcmask 31744  }
  0x48   : > { %8073 = vmatprep.subr.bf16.mxu0 %v9361_v0  ;;  %8217 = vmatprep.subr.bf16.mxu1 %v9361_v0 }
  0x49   : > { %v474_v20 = vand.u32 4294901760, %v473_v21 }
  0x4b   : > { %8075 = vmatpush3.bf16.msra.mxu0 %v9517_v55  ;;  %8219 = vmatpush3.bf16.msra.mxu1 %v9517_v55 }
  0x4c   : > { %8076 = vmatprep.subr.bf16.mxu0 %v9361_v0  ;;  %8220 = vmatprep.subr.bf16.mxu1 %v9361_v0 }
  0x4e   : > { %6405 = vmatmul.mubr.f32.vlgmr.msra.gmra.mrb[0].mxu0 %v358_v49  ;;  %6615 = vmatmul.mubr.f32.vlgmr.msra.gmra.mrb[0].mxu1 %v1000_v56  ;;  %v432_v49 = vand.u32 4294901760, %v431_v63  ;;  %v445_v56 = vsub.f32 %v9551_v7, %v444_v28  ;;  %v188_v7 = vld [vmem:[#allocation2 + $0x30] sm:$0xff] }
  0x4f   : > { %8078 = vmatpush3.bf16.msra.mxu0 %v8077_v62  ;;  %8222 = vmatpush3.bf16.msra.mxu1 %v8077_v62  ;;  %v460_v62 = vand.u32 4294901760, %v459_v27  ;;  %v197_v27 = vld [vmem:[#allocation2 + $0x78] sm:$0xff] }
  0x50   : > { %8079 = vmatprep.subr.bf16.mxu0 %v9361_v0  ;;  %8223 = vmatprep.subr.bf16.mxu1 %v9361_v0  ;;  %v8089_v26 = vpack.c.bf16 %v432_v49, %v425_v23  ;;  %v446_v50 = vand.u32 4294901760, %v445_v56  ;;  %v194_v23 = vld [vmem:[#allocation2 + $0x60] sm:$0xff]  ;;  %v195_v49 = vld [vmem:[#allocation2 + $0x68] sm:$0xff]  ;;  %v196_v56 = vld [vmem:[#allocation2 + $0x70] sm:$0xff] }
  0x51   : > { %6439 = vmatprep.mubr.msk.f32.mxu0 %vm9362_vm0, %v9363_v1  ;;  %6649 = vmatprep.mubr.msk.f32.mxu1 %vm9362_vm0, %v9363_v1  ;;  %v8095_v31 = vpack.c.bf16 %v460_v62, %v453_v60  ;;  %v1614_v21 = vand.u32 4294901760, %v194_v23 }
  0x52   : > { %v8092_v28 = vpack.c.bf16 %v446_v50, %v439_v33 }
  0x53   : > { %8081 = vmatpush3.bf16.msra.mxu0 %v8080_v9  ;;  %8225 = vmatpush3.bf16.msra.mxu1 %v8080_v9  ;;  %v467_v9 = vand.u32 4294901760, %v466_v30 }
  0x54   : > { %8082 = vmatprep.subr.bf16.mxu0 %v9361_v0  ;;  %8226 = vmatprep.subr.bf16.mxu1 %v9361_v0 }
  0x55   : > { %v8098_v32 = vpack.c.bf16 %v474_v20, %v467_v9  ;;  %v1620_v9 = vand.u32 4294901760, %v196_v56  ;;  %v1623_v20 = vand.u32 4294901760, %v197_v27 }
  0x57   : > { %8084 = vmatpush3.bf16.msra.mxu0 %v8083_v61  ;;  %8228 = vmatpush3.bf16.msra.mxu1 %v8083_v61  ;;  %v8101_v61 = vpack.c.bf16 %v9492_v37, %v9484_v35  ;;  %v8107_v35 = vpack.c.bf16 %v9526_v58, %v9523_v57  ;;  %v8110_v37 = vpack.c.bf16 %v9543_v3, %v9540_v2  ;;  %v11383_v2 = vand.u32 4294901760, %v9490_v36 }
  0x58   : > { %8085 = vmatprep.subr.bf16.mxu0 %v9361_v0  ;;  %8229 = vmatprep.subr.bf16.mxu1 %v9361_v0  ;;  %v8119_v57 = vpack.c.bf16 %v9558_v10, %v9553_v8  ;;  %v8122_v58 = vpack.c.bf16 %v9562_v14, %v9560_v11  ;;  %v11384_v3 = vand.u32 4294901760, %v9511_v52  ;;  %v189_v8 = vld [vmem:[#allocation2 + $0x38] sm:$0xff]  ;;  %v1596_v10 = vand.u32 4294901760, %v188_v7 }
  0x59   : > { %v1599_v11 = vand.u32 4294901760, %v189_v8 }
  0x5a   : > { %v9838_v33 = vsub.f32 %v188_v7, %v1596_v10 }
  0x5b   : > { %8087 = vmatpush3.bf16.msra.mxu0 %v8086_v22  ;;  %8231 = vmatpush3.bf16.msra.mxu1 %v8086_v22  ;;  %v9818_v14 = vpack.c.bf16 %v1599_v11, %v1596_v10  ;;  %v9840_v50 = vsub.f32 %v189_v8, %v1599_v11 }
  0x5c   : > { %8088 = vmatprep.subr.bf16.mxu0 %v9361_v0  ;;  %8232 = vmatprep.subr.bf16.mxu1 %v9361_v0  ;;  %v11357_v11 = vand.u32 4294901760, %v9838_v33 }
  0x5f   : > { %8090 = vmatpush3.bf16.msra.mxu0 %v8089_v26  ;;  %8234 = vmatpush3.bf16.msra.mxu1 %v8089_v26 }
  0x60   : > { %8091 = vmatprep.subr.bf16.mxu0 %v9361_v0  ;;  %8235 = vmatprep.subr.bf16.mxu1 %v9361_v0 }
  0x63   : > { %8093 = vmatpush3.bf16.msra.mxu0 %v8092_v28  ;;  %8237 = vmatpush3.bf16.msra.mxu1 %v8092_v28 }
  0x64   : > { %8094 = vmatprep.subr.bf16.mxu0 %v9361_v0  ;;  %8238 = vmatprep.subr.bf16.mxu1 %v9361_v0 }
  0x67   : > { %8096 = vmatpush3.bf16.msra.mxu0 %v8095_v31  ;;  %8240 = vmatpush3.bf16.msra.mxu1 %v8095_v31  ;;  %v1617_v31 = vand.u32 4294901760, %v195_v49 }
  0x68   : > { %8097 = vmatprep.subr.bf16.mxu0 %v9361_v0  ;;  %8241 = vmatprep.subr.bf16.mxu1 %v9361_v0 }
  0x6b   : > { %8099 = vmatpush3.bf16.msra.mxu0 %v8098_v32  ;;  %8243 = vmatpush3.bf16.msra.mxu1 %v8098_v32  ;;  %v9854_v32 = vpack.c.bf16 %v1617_v31, %v1614_v21 }
  0x6c   : > { %8100 = vmatprep.subr.bf16.mxu0 %v9361_v0  ;;  %8244 = vmatprep.subr.bf16.mxu1 %v9361_v0 }
  0x6e   : > { %6440 = vmatmul.mubr.f32.vlgmr.msra.gmra.mrb[0].mxu0 %v9476_v24  ;;  %6650 = vmatmul.mubr.f32.vlgmr.msra.gmra.mrb[0].mxu1 %v9496_v41 }
  0x6f   : > { %8102 = vmatpush3.bf16.msra.mxu0 %v8101_v61  ;;  %8246 = vmatpush3.bf16.msra.mxu1 %v8101_v61  ;;  %v9856_v61 = vsub.f32 %v194_v23, %v1614_v21 }
  0x70   : > { %8103 = vmatprep.subr.bf16.mxu0 %v9361_v0  ;;  %8247 = vmatprep.subr.bf16.mxu1 %v9361_v0 }
  0x71   : > { %6474 = vmatprep.mubr.msk.f32.mxu0 %vm9362_vm0, %v9363_v1  ;;  %6684 = vmatprep.mubr.msk.f32.mxu1 %vm9362_vm0, %v9363_v1 }
  0x73   : > { %8105 = vmatpush3.bf16.msra.mxu0 %v8104_v15  ;;  %8249 = vmatpush3.bf16.msra.mxu1 %v8104_v15  ;;  %v9858_v15 = vsub.f32 %v195_v49, %v1617_v31 }
  0x74   : > { %8106 = vmatprep.subr.bf16.mxu0 %v9361_v0  ;;  %8250 = vmatprep.subr.bf16.mxu1 %v9361_v0 }
  0x77   : > { %8108 = vmatpush3.bf16.msra.mxu0 %v8107_v35  ;;  %8252 = vmatpush3.bf16.msra.mxu1 %v8107_v35  ;;  %v9860_v35 = vsub.f32 %v196_v56, %v1620_v9 }
  0x78   : > { %8109 = vmatprep.subr.bf16.mxu0 %v9361_v0  ;;  %8253 = vmatprep.subr.bf16.mxu1 %v9361_v0 }
  0x7b   : > { %8111 = vmatpush3.bf16.msra.mxu0 %v8110_v37  ;;  %8255 = vmatpush3.bf16.msra.mxu1 %v8110_v37  ;;  %v9862_v37 = vsub.f32 %v197_v27, %v1623_v20 }
  0x7c   : > { %8112 = vmatprep.subr.bf16.mxu0 %v9361_v0  ;;  %8256 = vmatprep.subr.bf16.mxu1 %v9361_v0 }
  0x7f   : > { %8114 = vmatpush3.bf16.msra.mxu0 %v8113_v38  ;;  %8258 = vmatpush3.bf16.msra.mxu1 %v8113_v38 }
  0x80   : > { %8115 = vmatprep.subr.bf16.mxu0 %v9361_v0  ;;  %8259 = vmatprep.subr.bf16.mxu1 %v9361_v0 }
  0x83   : > { %8117 = vmatpush3.bf16.msra.mxu0 %v8116_v51  ;;  %8261 = vmatpush3.bf16.msra.mxu1 %v8116_v51 }
  0x84   : > { %8118 = vmatprep.subr.bf16.mxu0 %v9361_v0  ;;  %8262 = vmatprep.subr.bf16.mxu1 %v9361_v0 }
  0x87   : > { %8120 = vmatpush3.bf16.msra.mxu0 %v8119_v57  ;;  %8264 = vmatpush3.bf16.msra.mxu1 %v8119_v57  ;;  %v9867_v57 = vpack.c.bf16 %v1623_v20, %v1620_v9 }
  0x88   : > { %8121 = vmatprep.subr.bf16.mxu0 %v9361_v0  ;;  %8265 = vmatprep.subr.bf16.mxu1 %v9361_v0 }
  0x8b   : > { %8123 = vmatpush3.bf16.msra.mxu0 %v8122_v58  ;;  %8267 = vmatpush3.bf16.msra.mxu1 %v8122_v58 }
  0x8c   : > { %8124 = vmatprep.subr.bf16.mxu0 %v9361_v0  ;;  %8268 = vmatprep.subr.bf16.mxu1 %v9361_v0 }
  0x8e   : > { %6475 = vmatmul.mubr.f32.vlgmr.msra.gmra.mrb[0].mxu0 %v9490_v36  ;;  %6685 = vmatmul.mubr.f32.vlgmr.msra.gmra.mrb[0].mxu1 %v9511_v52  ;;  %v185_v52 = vld [vmem:[#allocation2 + $0x18] sm:$0xff] }
  0x8f   : > { %8126 = vmatpush3.bf16.msra.mxu0 %v9446_v12  ;;  %8270 = vmatpush3.bf16.msra.mxu1 %v9446_v12 }
  0x90   : > { %8127 = vmatprep.subr.bf16.mxu0 %v9361_v0  ;;  %8271 = vmatprep.subr.bf16.mxu1 %v9361_v0 }
  0x91   : > { %6509 = vmatprep.mubr.msk.f32.mxu0 %vm9362_vm0, %v9363_v1  ;;  %6719 = vmatprep.mubr.msk.f32.mxu1 %vm9362_vm0, %v9363_v1 }
  0x93   : > { %8129 = vmatpush3.bf16.msra.mxu0 %v9450_v13  ;;  %8273 = vmatpush3.bf16.msra.mxu1 %v9450_v13 }
  0x94   : > { %8130 = vmatprep.subr.bf16.mxu0 %v9361_v0  ;;  %8274 = vmatprep.subr.bf16.mxu1 %v9361_v0 }
  0x97   : > { %8132 = vmatpush3.bf16.msra.mxu0 %v9469_v19  ;;  %8276 = vmatpush3.bf16.msra.mxu1 %v9469_v19 }
  0x98   : > { %8133 = vmatprep.subr.bf16.mxu0 %v9361_v0  ;;  %8277 = vmatprep.subr.bf16.mxu1 %v9361_v0 }
  0x9b   : > { %8135 = vmatpush3.bf16.msra.mxu0 %v9482_v29  ;;  %8279 = vmatpush3.bf16.msra.mxu1 %v9482_v29 }
  0x9c   : > { %8136 = vmatprep.subr.bf16.mxu0 %v9361_v0  ;;  %8280 = vmatprep.subr.bf16.mxu1 %v9361_v0 }
  0x9f   : > { %8138 = vmatpush3.bf16.msra.mxu0 %v9500_v46  ;;  %8282 = vmatpush3.bf16.msra.mxu1 %v9500_v46 }
  0xa0   : > { %8139 = vmatprep.subr.bf16.mxu0 %v9361_v0  ;;  %8283 = vmatprep.subr.bf16.mxu1 %v9361_v0 }
  0xa3   : > { %8141 = vmatpush3.bf16.msra.mxu0 %v9513_v53  ;;  %8285 = vmatpush3.bf16.msra.mxu1 %v9513_v53 }
  0xa4   : > { %8142 = vmatprep.subr.bf16.mxu0 %v9361_v0  ;;  %8286 = vmatprep.subr.bf16.mxu1 %v9361_v0 }
  0xa7   : > { %8144 = vmatpush3.bf16.msra.mxu0 %v9515_v54  ;;  %8288 = vmatpush3.bf16.msra.mxu1 %v9515_v54 }
  0xa8   : > { %8145 = vmatprep.subr.bf16.mxu0 %v9361_v0  ;;  %8289 = vmatprep.subr.bf16.mxu1 %v9361_v0 }
  0xab   : > { %8147 = vmatpush3.bf16.msra.mxu0 %v9517_v55  ;;  %8291 = vmatpush3.bf16.msra.mxu1 %v9517_v55 }
  0xac   : > { %8148 = vmatprep.subr.bf16.mxu0 %v9361_v0  ;;  %8292 = vmatprep.subr.bf16.mxu1 %v9361_v0 }
  0xae   : > { %6510 = vmatmul.mubr.f32.vlgmr.msra.gmra.mrb[0].mxu0 %v11383_v2  ;;  %6720 = vmatmul.mubr.f32.vlgmr.msra.gmra.mrb[0].mxu1 %v11384_v3 }
  0xaf   : > { %8150 = vmatpush3.bf16.msra.mxu0 %v9583_v34  ;;  %8294 = vmatpush3.bf16.msra.mxu1 %v9583_v34  ;;  %v190_v34 = vld [vmem:[#allocation2 + $0x40] sm:$0xff] }
  0xb0   : > { %8151 = vmatprep.subr.bf16.mxu0 %v9361_v0  ;;  %8295 = vmatprep.subr.bf16.mxu1 %v9361_v0 }
  0xb1   : > { %6544 = vmatprep.mubr.msk.f32.mxu0 %vm9362_vm0, %v9363_v1  ;;  %6754 = vmatprep.mubr.msk.f32.mxu1 %vm9362_vm0, %v9363_v1 }
  0xb3   : > { %8153 = vmatpush3.bf16.msra.mxu0 %v9587_v39  ;;  %8297 = vmatpush3.bf16.msra.mxu1 %v9587_v39  ;;  %v191_v39 = vld [vmem:[#allocation2 + $0x48] sm:$0xff] }
  0xb4   : > { %8154 = vmatprep.subr.bf16.mxu0 %v9361_v0  ;;  %8298 = vmatprep.subr.bf16.mxu1 %v9361_v0 }
  0xb7   : > { %8156 = vmatpush3.bf16.msra.mxu0 %v9589_v40  ;;  %8300 = vmatpush3.bf16.msra.mxu1 %v9589_v40  ;;  %v1602_v40 = vand.u32 4294901760, %v190_v34 }
  0xb8   : > { %8157 = vmatprep.subr.bf16.mxu0 %v9361_v0  ;;  %8301 = vmatprep.subr.bf16.mxu1 %v9361_v0 }
  0xb9   : > { %v9842_v60 = vsub.f32 %v190_v34, %v1602_v40  ;;  %v11356_v34 = vand.u32 4294901760, %v9840_v50 }
  0xbb   : > { %8159 = vmatpush3.bf16.msra.mxu0 %v9591_v42  ;;  %8303 = vmatpush3.bf16.msra.mxu1 %v9591_v42  ;;  %v1605_v42 = vand.u32 4294901760, %v191_v39 }
  0xbc   : > { %8160 = vmatprep.subr.bf16.mxu0 %v9361_v0  ;;  %8304 = vmatprep.subr.bf16.mxu1 %v9361_v0 }
  0xbd   : > { %v9844_v28 = vsub.f32 %v191_v39, %v1605_v42 }
  0xbf   : > { %8162 = vmatpush3.bf16.msra.mxu0 %v9593_v43  ;;  %8306 = vmatpush3.bf16.msra.mxu1 %v9593_v43  ;;  %v9822_v43 = vpack.c.bf16 %v1605_v42, %v1602_v40  ;;  %v1714_v40 = vsub.f32 %v9838_v33, %v11357_v11  ;;  %v1721_v42 = vsub.f32 %v9840_v50, %v11356_v34 }
  0xc0   : > { %8163 = vmatprep.subr.bf16.mxu0 %v9361_v0  ;;  %8307 = vmatprep.subr.bf16.mxu1 %v9361_v0 }
  0xc3   : > { %8165 = vmatpush3.bf16.msra.mxu0 %v9595_v44  ;;  %8309 = vmatpush3.bf16.msra.mxu1 %v9595_v44  ;;  %v192_v44 = vld [vmem:[#allocation2 + $0x50] sm:$0xff] }
  0xc4   : > { %8166 = vmatprep.subr.bf16.mxu0 %v9361_v0  ;;  %8310 = vmatprep.subr.bf16.mxu1 %v9361_v0 }
  0xc7   : > { %8168 = vmatpush3.bf16.msra.mxu0 %v9597_v45  ;;  %8312 = vmatpush3.bf16.msra.mxu1 %v9597_v45  ;;  %v193_v45 = vld [vmem:[#allocation2 + $0x58] sm:$0xff] }
  0xc8   : > { %8169 = vmatprep.subr.bf16.mxu0 %v9361_v0  ;;  %8313 = vmatprep.subr.bf16.mxu1 %v9361_v0  ;;  %v1611_v16 = vand.u32 4294901760, %v193_v45 }
  0xca   : > { %v9850_v59 = vsub.f32 %v193_v45, %v1611_v16  ;;  %v1722_v45 = vand.u32 4294901760, %v1721_v42 }
  0xcb   : > { %8171 = vmatpush3.bf16.msra.mxu0 %v9603_v47  ;;  %8315 = vmatpush3.bf16.msra.mxu1 %v9603_v47  ;;  %v1608_v47 = vand.u32 4294901760, %v192_v44 }
  0xcc   : > { %8172 = vmatprep.subr.bf16.mxu0 %v9361_v0  ;;  %8316 = vmatprep.subr.bf16.mxu1 %v9361_v0  ;;  %v11352_v9 = vand.u32 4294901760, %v9850_v59 }
  0xcd   : > { %v9846_v62 = vpack.c.bf16 %v1611_v16, %v1608_v47  ;;  %v9848_v30 = vsub.f32 %v192_v44, %v1608_v47  ;;  %v1715_v44 = vand.u32 4294901760, %v1714_v40  ;;  %v11355_v47 = vand.u32 4294901760, %v9842_v60 }
  0xce   : > { %6545 = vmatmul.mubr.f32.vlgmr.msra.gmra.mrb[0].mxu0 %v9476_v24  ;;  %6755 = vmatmul.mubr.f32.vlgmr.msra.gmra.mrb[0].mxu1 %v9496_v41  ;;  %v11354_v16 = vand.u32 4294901760, %v9844_v28  ;;  %v11348_v40 = vand.u32 4294901760, %v9862_v37 }
  0xcf   : > { %8174 = vmatpush3.bf16.msra.mxu0 %v9446_v12  ;;  %8318 = vmatpush3.bf16.msra.mxu1 %v9446_v12  ;;  %v182_v12 = vld [vmem:[#allocation2] sm:$0xff]  ;;  %v9910_v23 = vpack.c.bf16 %v1722_v45, %v1715_v44  ;;  %v1728_v49 = vsub.f32 %v9842_v60, %v11355_v47  ;;  %v11353_v31 = vand.u32 4294901760, %v9848_v30 }
  0xd0   : > { %8175 = vmatprep.subr.bf16.mxu0 %v9361_v0  ;;  %8319 = vmatprep.subr.bf16.mxu1 %v9361_v0  ;;  %v1735_v56 = vsub.f32 %v9844_v28, %v11354_v16  ;;  %v1777_v45 = vsub.f32 %v9862_v37, %v11348_v40  ;;  %v5548_v47 = vld [vmem:[%s11341_s2 + $0x1] ss:$0 sm:$0xff] }
  0xd1   : > { %6579 = vmatprep.mubr.msk.f32.mxu0 %vm9362_vm0, %v9363_v1  ;;  %6789 = vmatprep.mubr.msk.f32.mxu1 %vm9362_vm0, %v9363_v1  ;;  %v1729_v27 = vand.u32 4294901760, %v1728_v49 }
  0xd2   : > { %v1736_v21 = vand.u32 4294901760, %v1735_v56  ;;  %v1778_v56 = vand.u32 4294901760, %v1777_v45 }
  0xd3   : > { %8177 = vmatpush3.bf16.msra.mxu0 %v9450_v13  ;;  %8321 = vmatpush3.bf16.msra.mxu1 %v9450_v13  ;;  %v183_v13 = vld [vmem:[#allocation2 + $0x8] sm:$0xff] }
  0xd4   : > { %8178 = vmatprep.subr.bf16.mxu0 %v9361_v0  ;;  %8322 = vmatprep.subr.bf16.mxu1 %v9361_v0  ;;  %v8377_v20 = vpack.c.bf16 %v1736_v21, %v1729_v27 }
  0xd7   : > { %8180 = vmatpush3.bf16.msra.mxu0 %v9469_v19  ;;  %8324 = vmatpush3.bf16.msra.mxu1 %v9469_v19  ;;  %v1578_v19 = vand.u32 4294901760, %v182_v12 }
  0xd8   : > { %8181 = vmatprep.subr.bf16.mxu0 %v9361_v0  ;;  %8325 = vmatprep.subr.bf16.mxu1 %v9361_v0 }
  0xd9   : > { %v9826_v48 = vsub.f32 %v182_v12, %v1578_v19 }
  0xdb   : > { %8183 = vmatpush3.bf16.msra.mxu0 %v9482_v29  ;;  %8327 = vmatpush3.bf16.msra.mxu1 %v9482_v29  ;;  %v1581_v29 = vand.u32 4294901760, %v183_v13  ;;  %v1671_v38 = vand.u32 4294901760, %v9826_v48 }
  0xdc   : > { %8184 = vmatprep.subr.bf16.mxu0 %v9361_v0  ;;  %8328 = vmatprep.subr.bf16.mxu1 %v9361_v0 }
  0xdd   : > { %v9806_v36 = vpack.c.bf16 %v1581_v29, %v1578_v19  ;;  %v9828_v63 = vsub.f32 %v183_v13, %v1581_v29  ;;  %v1672_v58 = vsub.f32 %v9826_v48, %v1671_v38 }
  0xdf   : > { %8186 = vmatpush3.bf16.msra.mxu0 %v9500_v46  ;;  %8330 = vmatpush3.bf16.msra.mxu1 %v9500_v46  ;;  %v184_v46 = vld [vmem:[#allocation2 + $0x10] sm:$0xff]  ;;  %v1678_v51 = vand.u32 4294901760, %v9828_v63  ;;  %v1673_v3 = vand.u32 4294901760, %v1672_v58  ;;  %v1742_v58 = vsub.f32 %v9848_v30, %v11353_v31  ;;  %v8389_v21 = vpack.c.bf16 %v9828_v63, %v9826_v48  ;;  %v5547_v31 = vld [vmem:[%s11341_s2] ss:$0 sm:$0xff] }
  0xe0   : > { %8187 = vmatprep.subr.bf16.mxu0 %v9361_v0  ;;  %8331 = vmatprep.subr.bf16.mxu1 %v9361_v0 }
  0xe1   : > { %v1679_v2 = vsub.f32 %v9828_v63, %v1678_v51  ;;  %v11385_v63 = vand.u32 4294901760, %v9838_v33 }
  0xe3   : > { %8189 = vmatpush3.bf16.msra.mxu0 %v9513_v53  ;;  %8333 = vmatpush3.bf16.msra.mxu1 %v9513_v53  ;;  %v1584_v53 = vand.u32 4294901760, %v184_v46  ;;  %v1680_v12 = vand.u32 4294901760, %v1679_v2  ;;  %v1749_v2 = vsub.f32 %v9850_v59, %v11352_v9 }
  0xe4   : > { %8190 = vmatprep.subr.bf16.mxu0 %v9361_v0  ;;  %8334 = vmatprep.subr.bf16.mxu1 %v9361_v0 }
  0xe5   : > { %v9830_v17 = vsub.f32 %v184_v46, %v1584_v53  ;;  %v9879_v29 = vpack.c.bf16 %v1680_v12, %v1673_v3  ;;  %v1743_v3 = vand.u32 4294901760, %v1742_v58  ;;  %v1750_v12 = vand.u32 4294901760, %v1749_v2 }
  0xe7   : > { %8192 = vmatpush3.bf16.msra.mxu0 %v9515_v54  ;;  %8336 = vmatpush3.bf16.msra.mxu1 %v9515_v54  ;;  %v186_v54 = vld [vmem:[#allocation2 + $0x20] sm:$0xff]  ;;  %v1685_v13 = vand.u32 4294901760, %v9830_v17 }
  0xe8   : > { %8193 = vmatprep.subr.bf16.mxu0 %v9361_v0  ;;  %8337 = vmatprep.subr.bf16.mxu1 %v9361_v0  ;;  %v1590_v4 = vand.u32 4294901760, %v186_v54 }
  0xe9   : > { %v1686_v46 = vsub.f32 %v9830_v17, %v1685_v13 }
  0xea   : > { %v9834_v25 = vsub.f32 %v186_v54, %v1590_v4 }
  0xeb   : > { %8195 = vmatpush3.bf16.msra.mxu0 %v9517_v55  ;;  %8339 = vmatpush3.bf16.msra.mxu1 %v9517_v55  ;;  %v187_v55 = vld [vmem:[#allocation2 + $0x28] sm:$0xff] }
  0xec   : > { %8340 = vmatprep.subr.bf16.mxu0 %v9361_v0  ;;  %8484 = vmatprep.subr.bf16.mxu1 %v9361_v0  ;;  %v1593_v5 = vand.u32 4294901760, %v187_v55  ;;  %v1699_v54 = vand.u32 4294901760, %v9834_v25 }
  0xee   : > { %6580 = vmatmul.mubr.f32.vlgmr.msra.gmra.mrb[0].mxu0 %v9476_v24  ;;  %6790 = vmatmul.mubr.f32.vlgmr.msra.gmra.mrb[0].mxu1 %v9496_v41  ;;  %v1587_v24 = vand.u32 4294901760, %v185_v52  ;;  %v9814_v6 = vpack.c.bf16 %v1593_v5, %v1590_v4  ;;  %v9836_v26 = vsub.f32 %v187_v55, %v1593_v5  ;;  %v1700_v5 = vsub.f32 %v9834_v25, %v1699_v54 }
  0xef   : > { %6824 = vmatprep.mubr.msk.f32.mxu0 %vm9362_vm0, %v9363_v1  ;;  %7034 = vmatprep.mubr.msk.f32.mxu1 %vm9362_vm0, %v9363_v1 }
  0xf0   : > { %8342 = vmatpush3.bf16.msra.mxu0 %v9806_v36  ;;  %v9810_v41 = vpack.c.bf16 %v1587_v24, %v1584_v53  ;;  %v9832_v22 = vsub.f32 %v185_v52, %v1587_v24  ;;  %v1687_v53 = vand.u32 4294901760, %v1686_v46  ;;  %v1706_v55 = vand.u32 4294901760, %v9836_v26 }
  0xf1   : > { %8343 = vmatprep.subr.bf16.mxu0 %v9361_v0  ;;  %v1701_v8 = vand.u32 4294901760, %v1700_v5  ;;  %v11351_v46 = vand.u32 4294901760, %v9856_v61  ;;  %v8395_v2 = vpack.c.bf16 %v9836_v26, %v9834_v25  ;;  %v11389_v25 = vand.u32 4294901760, %v9848_v30 }
  0xf2   : > { %v1692_v19 = vand.u32 4294901760, %v9832_v22  ;;  %v1707_v7 = vsub.f32 %v9836_v26, %v1706_v55  ;;  %v8392_v58 = vpack.c.bf16 %v9832_v22, %v9830_v17  ;;  %v8443_v48 = vpack.c.bf16 %v1706_v55, %v1699_v54 }
  0xf3   : > { %v11386_v17 = vand.u32 4294901760, %v9840_v50  ;;  %v11390_v26 = vand.u32 4294901760, %v9850_v59 }
  0xf4   : > { %8345 = vmatpush3.bf16.msra.mxu0 %v9810_v41  ;;  %v1693_v52 = vsub.f32 %v9832_v22, %v1692_v19  ;;  %v1708_v10 = vand.u32 4294901760, %v1707_v7 }
  0xf5   : > { %8346 = vmatprep.subr.bf16.mxu0 %v9361_v0  ;;  %v8446_v22 = vpack.c.bf16 %v11386_v17, %v11385_v63 }
  0xf6   : > { %v1694_v24 = vand.u32 4294901760, %v1693_v52  ;;  %v9900_v39 = vpack.c.bf16 %v1708_v10, %v1701_v8  ;;  %v11350_v52 = vand.u32 4294901760, %v9858_v15  ;;  %v11349_v10 = vand.u32 4294901760, %v9860_v35 }
  0xf8   : > { %8348 = vmatpush3.bf16.msra.mxu0 %v9814_v6  ;;  %v9890_v4 = vpack.c.bf16 %v1694_v24, %v1687_v53  ;;  %v8380_v53 = vpack.c.bf16 %v1750_v12, %v1743_v3  ;;  %v1756_v24 = vsub.f32 %v9856_v61, %v11351_v46  ;;  %v1763_v5 = vsub.f32 %v9858_v15, %v11350_v52 }
  0xf9   : > { %8349 = vmatprep.subr.bf16.mxu0 %v9361_v0  ;;  %v1770_v44 = vsub.f32 %v9860_v35, %v11349_v10  ;;  %v8398_v3 = vpack.c.bf16 %v9840_v50, %v9838_v33  ;;  %v8401_v12 = vpack.c.bf16 %v9844_v28, %v9842_v60  ;;  %v11391_v33 = vand.u32 4294901760, %v9856_v61 }
  0xfa   : > { %v1757_v7 = vand.u32 4294901760, %v1756_v24  ;;  %v1764_v8 = vand.u32 4294901760, %v1763_v5  ;;  %v8404_v24 = vpack.c.bf16 %v9850_v59, %v9848_v30  ;;  %v8407_v5 = vpack.c.bf16 %v9858_v15, %v9856_v61  ;;  %v246_v30 = vld [vmem:[#allocation2 + $0x1e8] sm:$0xff] }
  0xfb   : > { %v1771_v49 = vand.u32 4294901760, %v1770_v44  ;;  %v11392_v50 = vand.u32 4294901760, %v9858_v15  ;;  %v247_v15 = vld [vmem:[#allocation2 + $0x1f0] sm:$0xff] }
  0xfc   : > { %8351 = vmatpush3.bf16.msra.mxu0 %v9818_v14  ;;  %v8383_v42 = vpack.c.bf16 %v1764_v8, %v1757_v7  ;;  %v8410_v7 = vpack.c.bf16 %v9862_v37, %v9860_v35 }
  0xfd   : > { %8352 = vmatprep.subr.bf16.mxu0 %v9361_v0  ;;  %v8386_v27 = vpack.c.bf16 %v1778_v56, %v1771_v49  ;;  %v8455_v54 = vpack.c.bf16 %v11392_v50, %v11391_v33 }
 0x100   : > { %8354 = vmatpush3.bf16.msra.mxu0 %v9822_v43 }
 0x101   : > { %8355 = vmatprep.subr.bf16.mxu0 %v9361_v0 }
 0x104   : > { %8357 = vmatpush3.bf16.msra.mxu0 %v9846_v62 }
 0x105   : > { %8358 = vmatprep.subr.bf16.mxu0 %v9361_v0 }
 0x108   : > { %8360 = vmatpush3.bf16.msra.mxu0 %v9854_v32 }
 0x109   : > { %8361 = vmatprep.subr.bf16.mxu0 %v9361_v0 }
 0x10c   : > { %8363 = vmatpush3.bf16.msra.mxu0 %v9867_v57 }
 0x10d   : > { %8364 = vmatprep.subr.bf16.mxu0 %v9361_v0 }
 0x1c1   : > { %v910_v8 = vpop.f32.mrb[0].mxu0  ;;  %v1552_v44 = vpop.f32.mrb[0].mxu1 }
 0x1c2   : > { %v1556_v45 = vmul.f32 %v910_v8, %v910_v8  ;;  %v6581_v49 = vpop.f32.mrb[1].mxu0  ;;  %v6791_v56 = vpop.f32.mrb[1].mxu1  ;;  %v1559_v46 = vsub.f32 %v9465_v18, %v910_v8 }
 0x1c3   : > { %v10055_v56 = vld [vmem:[#allocation2 + $0x1c8] sm:$0xff] }
 0x1c4   : > { %v1557_v40 = vsub.f32 %v1552_v44, %v1556_v45  ;;  %v10053_v45 = vld [vmem:[#allocation2 + $0x1c0] sm:$0xff] }
 0x1c6   : > { %v1558_v10 = vmax.f32 %v1557_v40, 0.0 }
 0x1c8   : > { %v1560_v52 = vadd.f32 1e-05, %v1558_v10 }
 0x1ca   : > { %9312 = vrsqrt.f32 %v1560_v52 }
 0x1d4   : > { %v9313_v9 = vpop.eup %9312 }
 0x1d5   : > { %v1562_v16 = vmul.f32 %v9313_v9, %v1559_v46  ;;  %v10019_v46 = vld [vmem:[#allocation2 + $0x1a8] sm:$0xff] }
 0x1d7   : > { %v1567_v34 = vmul.f32 %v5547_v31, %v1562_v16 }
 0x1d9   : > { %v1572_v11 = vadd.f32 %v5548_v47, %v1567_v34  ;;  %v9999_v47 = vld [vmem:[#allocation2 + $0x198] sm:$0xff] }
 0x1db   : > { %v9965_v49 = vand.u32 4294901760, %v1572_v11 }
 0x1dd   : > { %v9968_v40 = vsub.f32 %v1572_v11, %v9965_v49 }
 0x1df   : > { %v1660_v52 = vand.u32 4294901760, %v9968_v40 }
 0x1e1   : > { %v1661_v18 = vsub.f32 %v9968_v40, %v1660_v52 }
 0x1e3   : > { %v1662_v10 = vand.u32 4294901760, %v1661_v18  ;;  %v2244_v18 = vand.u32 4294901760, %v10053_v45 }
 0x1e5   : > { %6825 = vmatmul.mubr.f32.vlgmr.msra.gmra.mrb[2].mxu0 %v1662_v10 }
 0x1e6   : > { %8366 = vmatpush3.bf16.msra.mxu0 %v9879_v29  ;;  %6859 = vmatprep.mubr.msk.f32.mxu0 %vm9362_vm0, %v9363_v1  ;;  %v9989_v29 = vld [vmem:[#allocation2 + $0x180] sm:$0xff] }
 0x1e7   : > { %8367 = vmatprep.subr.bf16.mxu0 %v9361_v0  ;;  %v2220_v11 = vand.u32 4294901760, %v9989_v29 }
 0x1ea   : > { %8369 = vmatpush3.bf16.msra.mxu0 %v9890_v4  ;;  %v9991_v4 = vld [vmem:[#allocation2 + $0x188] sm:$0xff] }
 0x1eb   : > { %8370 = vmatprep.subr.bf16.mxu0 %v9361_v0  ;;  %v2223_v34 = vand.u32 4294901760, %v9991_v4 }
 0x1ed   : > { %v10008_v31 = vpack.c.bf16 %v2223_v34, %v2220_v11 }
 0x1ee   : > { %8372 = vmatpush3.bf16.msra.mxu0 %v9900_v39  ;;  %v9997_v39 = vld [vmem:[#allocation2 + $0x190] sm:$0xff] }
 0x1ef   : > { %8373 = vmatprep.subr.bf16.mxu0 %v9361_v0  ;;  %v2226_v16 = vand.u32 4294901760, %v9997_v39  ;;  %8486 = vmatpush3.bf16.msra.mxu1 %v10008_v31 }
 0x1f0   : > { %8487 = vmatprep.subr.bf16.mxu1 %v9361_v0 }
 0x1f2   : > { %8375 = vmatpush3.bf16.msra.mxu0 %v9910_v23  ;;  %v2229_v23 = vand.u32 4294901760, %v9999_v47 }
 0x1f3   : > { %8376 = vmatprep.subr.bf16.mxu0 %v9361_v0 }
 0x1f4   : > { %v10015_v9 = vpack.c.bf16 %v2229_v23, %v2226_v16 }
 0x1f6   : > { %8378 = vmatpush3.bf16.msra.mxu0 %v8377_v20  ;;  %v10017_v20 = vld [vmem:[#allocation2 + $0x1a0] sm:$0xff]  ;;  %8489 = vmatpush3.bf16.msra.mxu1 %v10015_v9 }
 0x1f7   : > { %8379 = vmatprep.subr.bf16.mxu0 %v9361_v0  ;;  %8490 = vmatprep.subr.bf16.mxu1 %v9361_v0 }
 0x1fa   : > { %8381 = vmatpush3.bf16.msra.mxu0 %v8380_v53  ;;  %v2232_v53 = vand.u32 4294901760, %v10017_v20 }
 0x1fb   : > { %8382 = vmatprep.subr.bf16.mxu0 %v9361_v0 }
 0x1fe   : > { %8384 = vmatpush3.bf16.msra.mxu0 %v8383_v42  ;;  %v2235_v42 = vand.u32 4294901760, %v10019_v46 }
 0x1ff   : > { %8385 = vmatprep.subr.bf16.mxu0 %v9361_v0 }
 0x202   : > { %8387 = vmatpush3.bf16.msra.mxu0 %v8386_v27  ;;  %v10033_v27 = vpack.c.bf16 %v2235_v42, %v2232_v53 }
 0x203   : > { %8388 = vmatprep.subr.bf16.mxu0 %v9361_v0 }
 0x204   : > { %8492 = vmatpush3.bf16.msra.mxu1 %v10033_v27 }
 0x205   : > { %6860 = vmatmul.mubr.f32.vlgmr.msra.gmra.mrb[2].mxu0 %v9965_v49  ;;  %8493 = vmatprep.subr.bf16.mxu1 %v9361_v0 }
 0x206   : > { %8390 = vmatpush3.bf16.msra.mxu0 %v8389_v21  ;;  %6894 = vmatprep.mubr.msk.f32.mxu0 %vm9362_vm0, %v9363_v1  ;;  %v10035_v21 = vld [vmem:[#allocation2 + $0x1b0] sm:$0xff] }
 0x207   : > { %8391 = vmatprep.subr.bf16.mxu0 %v9361_v0  ;;  %v2238_v8 = vand.u32 4294901760, %v10035_v21 }
 0x20a   : > { %8393 = vmatpush3.bf16.msra.mxu0 %v8392_v58  ;;  %v10037_v58 = vld [vmem:[#allocation2 + $0x1b8] sm:$0xff] }
 0x20b   : > { %8394 = vmatprep.subr.bf16.mxu0 %v9361_v0 }
 0x20e   : > { %8396 = vmatpush3.bf16.msra.mxu0 %v8395_v2  ;;  %v2241_v2 = vand.u32 4294901760, %v10037_v58 }
 0x20f   : > { %8397 = vmatprep.subr.bf16.mxu0 %v9361_v0 }
 0x210   : > { %v10051_v44 = vpack.c.bf16 %v2241_v2, %v2238_v8 }
 0x212   : > { %8399 = vmatpush3.bf16.msra.mxu0 %v8398_v3  ;;  %v2247_v3 = vand.u32 4294901760, %v10055_v56  ;;  %8495 = vmatpush3.bf16.msra.mxu1 %v10051_v44 }
 0x213   : > { %8400 = vmatprep.subr.bf16.mxu0 %v9361_v0  ;;  %8496 = vmatprep.subr.bf16.mxu1 %v9361_v0 }
 0x214   : > { %v10069_v10 = vpack.c.bf16 %v2247_v3, %v2244_v18 }
 0x216   : > { %8402 = vmatpush3.bf16.msra.mxu0 %v8401_v12  ;;  %8498 = vmatpush3.bf16.msra.mxu1 %v10069_v10  ;;  %v8437_v12 = vpack.c.bf16 %v1678_v51, %v1671_v38  ;;  %v11387_v38 = vand.u32 4294901760, %v9842_v60  ;;  %v11388_v51 = vand.u32 4294901760, %v9844_v28  ;;  %v11393_v60 = vand.u32 4294901760, %v9860_v35  ;;  %v248_v35 = vld [vmem:[#allocation2 + $0x1f8] sm:$0xff] }
 0x217   : > { %8403 = vmatprep.subr.bf16.mxu0 %v9361_v0  ;;  %8499 = vmatprep.subr.bf16.mxu1 %v9361_v0  ;;  %v11394_v28 = vand.u32 4294901760, %v9862_v37  ;;  %v2262_v37 = vand.u32 4294901760, %v247_v15 }
 0x219   : > { %v8458_v55 = vpack.c.bf16 %v11394_v28, %v11393_v60 }
 0x21a   : > { %8405 = vmatpush3.bf16.msra.mxu0 %v8404_v24  ;;  %v8440_v24 = vpack.c.bf16 %v1692_v19, %v1685_v13  ;;  %v8449_v13 = vpack.c.bf16 %v11388_v51, %v11387_v38  ;;  %v8452_v19 = vpack.c.bf16 %v11390_v26, %v11389_v25  ;;  %v10223_v26 = vsub.f32 %v247_v15, %v2262_v37 }
 0x21b   : > { %8406 = vmatprep.subr.bf16.mxu0 %v9361_v0  ;;  %v10257_v15 = vsub.f32 %v9989_v29, %v2220_v11  ;;  %v10277_v29 = vsub.f32 %v9999_v47, %v2229_v23  ;;  %v10292_v47 = vsub.f32 %v10017_v20, %v2232_v53  ;;  %v10297_v23 = vsub.f32 %v10019_v46, %v2235_v42 }
 0x21d   : > { %v2341_v42 = vand.u32 4294901760, %v10292_v47 }
 0x21e   : > { %8408 = vmatpush3.bf16.msra.mxu0 %v8407_v5 }
 0x21f   : > { %8409 = vmatprep.subr.bf16.mxu0 %v9361_v0 }
 0x222   : > { %8411 = vmatpush3.bf16.msra.mxu0 %v8410_v7 }
 0x223   : > { %8412 = vmatprep.subr.bf16.mxu0 %v9361_v0 }
 0x225   : > { %6895 = vmatmul.mubr.f32.vlgmr.msra.gmra.mrb[2].mxu0 %v9968_v40 }
 0x226   : > { %8414 = vmatpush3.bf16.msra.mxu0 %v9806_v36  ;;  %6929 = vmatprep.mubr.msk.f32.mxu0 %vm9362_vm0, %v9363_v1 }
 0x227   : > { %8415 = vmatprep.subr.bf16.mxu0 %v9361_v0 }
 0x22a   : > { %8417 = vmatpush3.bf16.msra.mxu0 %v9810_v41 }
 0x22b   : > { %8418 = vmatprep.subr.bf16.mxu0 %v9361_v0 }
 0x22e   : > { %8420 = vmatpush3.bf16.msra.mxu0 %v9814_v6 }
 0x22f   : > { %8421 = vmatprep.subr.bf16.mxu0 %v9361_v0 }
 0x232   : > { %8423 = vmatpush3.bf16.msra.mxu0 %v9818_v14 }
 0x233   : > { %8424 = vmatprep.subr.bf16.mxu0 %v9361_v0 }
 0x236   : > { %8426 = vmatpush3.bf16.msra.mxu0 %v9822_v43 }
 0x237   : > { %8427 = vmatprep.subr.bf16.mxu0 %v9361_v0 }
 0x23a   : > { %8429 = vmatpush3.bf16.msra.mxu0 %v9846_v62 }
 0x23b   : > { %8430 = vmatprep.subr.bf16.mxu0 %v9361_v0 }
 0x23e   : > { %8432 = vmatpush3.bf16.msra.mxu0 %v9854_v32 }
 0x23f   : > { %8433 = vmatprep.subr.bf16.mxu0 %v9361_v0 }
 0x242   : > { %8435 = vmatpush3.bf16.msra.mxu0 %v9867_v57 }
 0x243   : > { %8436 = vmatprep.subr.bf16.mxu0 %v9361_v0 }
 0x245   : > { %6930 = vmatmul.mubr.f32.vlgmr.msra.gmra.mrb[2].mxu0 %v1660_v52 }
 0x246   : > { %8438 = vmatpush3.bf16.msra.mxu0 %v8437_v12  ;;  %6964 = vmatprep.mubr.msk.f32.mxu0 %vm9362_vm0, %v9363_v1 }
 0x247   : > { %8439 = vmatprep.subr.bf16.mxu0 %v9361_v0 }
 0x24a   : > { %8441 = vmatpush3.bf16.msra.mxu0 %v8440_v24 }
 0x24b   : > { %8442 = vmatprep.subr.bf16.mxu0 %v9361_v0 }
 0x24e   : > { %8444 = vmatpush3.bf16.msra.mxu0 %v8443_v48 }
 0x24f   : > { %8445 = vmatprep.subr.bf16.mxu0 %v9361_v0 }
 0x252   : > { %8447 = vmatpush3.bf16.msra.mxu0 %v8446_v22 }
 0x253   : > { %8448 = vmatprep.subr.bf16.mxu0 %v9361_v0 }
 0x256   : > { %8450 = vmatpush3.bf16.msra.mxu0 %v8449_v13 }
 0x257   : > { %8451 = vmatprep.subr.bf16.mxu0 %v9361_v0 }
 0x25a   : > { %8453 = vmatpush3.bf16.msra.mxu0 %v8452_v19 }
 0x25b   : > { %8454 = vmatprep.subr.bf16.mxu0 %v9361_v0 }
 0x25e   : > { %8456 = vmatpush3.bf16.msra.mxu0 %v8455_v54  ;;  %v11359_v54 = vand.u32 4294901760, %v10223_v26 }
 0x25f   : > { %8457 = vmatprep.subr.bf16.mxu0 %v9361_v0 }
 0x262   : > { %8459 = vmatpush3.bf16.msra.mxu0 %v8458_v55  ;;  %v2412_v55 = vsub.f32 %v10223_v26, %v11359_v54 }
 0x263   : > { %8460 = vmatprep.subr.bf16.mxu0 %v9361_v0 }
 0x265   : > { %6965 = vmatmul.mubr.f32.vlgmr.msra.gmra.mrb[2].mxu0 %v9965_v49 }
 0x266   : > { %8462 = vmatpush3.bf16.msra.mxu0 %v9806_v36  ;;  %6999 = vmatprep.mubr.msk.f32.mxu0 %vm9362_vm0, %v9363_v1  ;;  %v243_v36 = vld [vmem:[#allocation2 + $0x1d0] sm:$0xff] }
 0x267   : > { %8463 = vmatprep.subr.bf16.mxu0 %v9361_v0 }
 0x26a   : > { %8465 = vmatpush3.bf16.msra.mxu0 %v9810_v41  ;;  %v244_v41 = vld [vmem:[#allocation2 + $0x1d8] sm:$0xff] }
 0x26b   : > { %8466 = vmatprep.subr.bf16.mxu0 %v9361_v0 }
 0x26e   : > { %8468 = vmatpush3.bf16.msra.mxu0 %v9814_v6  ;;  %v2250_v6 = vand.u32 4294901760, %v243_v36 }
 0x26f   : > { %8469 = vmatprep.subr.bf16.mxu0 %v9361_v0 }
 0x270   : > { %v10200_v7 = vsub.f32 %v243_v36, %v2250_v6 }
 0x272   : > { %8471 = vmatpush3.bf16.msra.mxu0 %v9818_v14  ;;  %v2253_v14 = vand.u32 4294901760, %v244_v41  ;;  %v2383_v40 = vand.u32 4294901760, %v10200_v7 }
 0x273   : > { %8472 = vmatprep.subr.bf16.mxu0 %v9361_v0 }
 0x274   : > { %v2384_v12 = vsub.f32 %v10200_v7, %v2383_v40 }
 0x276   : > { %8474 = vmatpush3.bf16.msra.mxu0 %v9822_v43  ;;  %v10182_v43 = vpack.c.bf16 %v2253_v14, %v2250_v6  ;;  %v2385_v17 = vand.u32 4294901760, %v2384_v12  ;;  %v2413_v6 = vand.u32 4294901760, %v2412_v55 }
 0x277   : > { %8475 = vmatprep.subr.bf16.mxu0 %v9361_v0 }
 0x278   : > { %8501 = vmatpush3.bf16.msra.mxu1 %v10182_v43 }
 0x279   : > { %8502 = vmatprep.subr.bf16.mxu1 %v9361_v0 }
 0x27a   : > { %8477 = vmatpush3.bf16.msra.mxu0 %v9846_v62  ;;  %v245_v62 = vld [vmem:[#allocation2 + $0x1e0] sm:$0xff] }
 0x27b   : > { %8478 = vmatprep.subr.bf16.mxu0 %v9361_v0  ;;  %v2256_v59 = vand.u32 4294901760, %v245_v62 }
 0x27d   : > { %v10212_v48 = vsub.f32 %v245_v62, %v2256_v59 }
 0x27e   : > { %8480 = vmatpush3.bf16.msra.mxu0 %v9854_v32  ;;  %v2259_v32 = vand.u32 4294901760, %v246_v30 }
 0x27f   : > { %8481 = vmatprep.subr.bf16.mxu0 %v9361_v0  ;;  %v11361_v38 = vand.u32 4294901760, %v10212_v48 }
 0x280   : > { %v10188_v61 = vpack.c.bf16 %v2259_v32, %v2256_v59  ;;  %v10214_v63 = vsub.f32 %v246_v30, %v2259_v32 }
 0x281   : > { %v2398_v25 = vsub.f32 %v10212_v48, %v11361_v38 }
 0x282   : > { %8483 = vmatpush3.bf16.msra.mxu0 %v9867_v57  ;;  %8504 = vmatpush3.bf16.msra.mxu1 %v10188_v61  ;;  %v2265_v57 = vand.u32 4294901760, %v248_v35  ;;  %v11360_v51 = vand.u32 4294901760, %v10214_v63  ;;  %v10248_v59 = vpack.c.bf16 %v10214_v63, %v10212_v48 }
 0x283   : > { %8628 = vmatprep.subr.bf16.mxu0 %v9361_v0  ;;  %8505 = vmatprep.subr.bf16.mxu1 %v9361_v0  ;;  %v2399_v50 = vand.u32 4294901760, %v2398_v25 }
 0x284   : > { %v10194_v5 = vpack.c.bf16 %v2265_v57, %v2262_v37  ;;  %v10225_v19 = vsub.f32 %v248_v35, %v2265_v57  ;;  %v2405_v33 = vsub.f32 %v10214_v63, %v11360_v51  ;;  %v10262_v35 = vsub.f32 %v9991_v4, %v2223_v34  ;;  %v5549_v37 = vld [vmem:[%s11341_s2 + $0x2] ss:$0 sm:$0xff] }
 0x285   : > { %7000 = vmatmul.mubr.f32.vlgmr.msra.gmra.mrb[2].mxu0 %v9965_v49  ;;  %v10202_v49 = vsub.f32 %v244_v41, %v2253_v14  ;;  %v2313_v57 = vand.u32 4294901760, %v10257_v15 }
 0x286   : > { %8630 = vmatpush3.bf16.msra.mxu0 %v10008_v31  ;;  %7244 = vmatprep.mubr.msk.f32.mxu0 %vm9362_vm0, %v9363_v1  ;;  %v11358_v60 = vand.u32 4294901760, %v10225_v19  ;;  %v2406_v28 = vand.u32 4294901760, %v2405_v33  ;;  %v10252_v32 = vpack.c.bf16 %v10225_v19, %v10223_v26  ;;  %v2320_v12 = vand.u32 4294901760, %v10262_v35 }
 0x287   : > { %8631 = vmatprep.subr.bf16.mxu0 %v9361_v0  ;;  %8507 = vmatpush3.bf16.msra.mxu1 %v10194_v5  ;;  %v11362_v52 = vand.u32 4294901760, %v10202_v49  ;;  %v10244_v30 = vpack.c.bf16 %v10202_v49, %v10200_v7  ;;  %v11398_v7 = vand.u32 4294901760, %v10223_v26  ;;  %v203_v26 = vld [vmem:[#allocation2 + $0xa0] sm:$0xff] }
 0x288   : > { %8508 = vmatprep.subr.bf16.mxu1 %v9361_v0  ;;  %v2419_v36 = vsub.f32 %v10225_v19, %v11358_v60  ;;  %v10238_v41 = vpack.c.bf16 %v2406_v28, %v2399_v50 }
 0x289   : > { %v2391_v24 = vsub.f32 %v10202_v49, %v11362_v52 }
 0x28a   : > { %8633 = vmatpush3.bf16.msra.mxu0 %v10015_v9  ;;  %v2420_v14 = vand.u32 4294901760, %v2419_v36 }
 0x28b   : > { %8634 = vmatprep.subr.bf16.mxu0 %v9361_v0  ;;  %v2392_v22 = vand.u32 4294901760, %v2391_v24  ;;  %v10272_v24 = vsub.f32 %v9997_v39, %v2226_v16  ;;  %v2334_v39 = vand.u32 4294901760, %v10277_v29 }
 0x28c   : > { %v10240_v62 = vpack.c.bf16 %v2420_v14, %v2413_v6  ;;  %v2348_v6 = vand.u32 4294901760, %v10297_v23  ;;  %v10321_v14 = vsub.f32 %v10035_v21, %v2238_v8  ;;  %v2342_v8 = vsub.f32 %v10292_v47, %v2341_v42 }
 0x28d   : > { %v10218_v13 = vpack.c.bf16 %v2392_v22, %v2385_v17  ;;  %v2314_v17 = vsub.f32 %v10257_v15, %v2313_v57  ;;  %v2321_v22 = vsub.f32 %v10262_v35, %v2320_v12  ;;  %v2327_v25 = vand.u32 4294901760, %v10272_v24 }
 0x28e   : > { %8636 = vmatpush3.bf16.msra.mxu0 %v10033_v27  ;;  %v2335_v20 = vsub.f32 %v10277_v29, %v2334_v39  ;;  %v2343_v38 = vand.u32 4294901760, %v2342_v8 }
 0x28f   : > { %8637 = vmatprep.subr.bf16.mxu0 %v9361_v0  ;;  %v2315_v28 = vand.u32 4294901760, %v2314_v17  ;;  %v2322_v55 = vand.u32 4294901760, %v2321_v22  ;;  %v2328_v36 = vsub.f32 %v10272_v24, %v2327_v25 }
 0x290   : > { %v2336_v22 = vand.u32 4294901760, %v2335_v20 }
 0x291   : > { %v2329_v17 = vand.u32 4294901760, %v2328_v36 }
 0x292   : > { %8639 = vmatpush3.bf16.msra.mxu0 %v10051_v44 }
 0x293   : > { %8640 = vmatprep.subr.bf16.mxu0 %v9361_v0  ;;  %v8512_v51 = vpack.c.bf16 %v2336_v22, %v2329_v17 }
 0x296   : > { %8642 = vmatpush3.bf16.msra.mxu0 %v10069_v10 }
 0x297   : > { %8643 = vmatprep.subr.bf16.mxu0 %v9361_v0 }
 0x29a   : > { %8645 = vmatpush3.bf16.msra.mxu0 %v10182_v43 }
 0x29b   : > { %8646 = vmatprep.subr.bf16.mxu0 %v9361_v0 }
 0x29e   : > { %8648 = vmatpush3.bf16.msra.mxu0 %v10188_v61 }
 0x29f   : > { %8649 = vmatprep.subr.bf16.mxu0 %v9361_v0 }
 0x2a2   : > { %8651 = vmatpush3.bf16.msra.mxu0 %v10194_v5 }
 0x2a3   : > { %8652 = vmatprep.subr.bf16.mxu0 %v9361_v0 }
 0x358   : > { %v2214_v4 = vpop.f32.mrb[2].mxu0 }
 0x359   : > { %v9204_v11 = vadd.f32 %v5549_v37, %v2214_v4  ;;  %v7001_v34 = vpop.f32.mrb[3].mxu0  ;;  %v10326_v37 = vsub.f32 %v10037_v58, %v2241_v2  ;;  %v2349_v58 = vsub.f32 %v10297_v23, %v2348_v6  ;;  %v2355_v2 = vand.u32 4294901760, %v10321_v14 }
 0x35a   : > { %v8509_v34 = vpack.c.bf16 %v2322_v55, %v2315_v28  ;;  %v10347_v28 = vsub.f32 %v10053_v45, %v2244_v18  ;;  %v10352_v55 = vsub.f32 %v10055_v56, %v2247_v3 }
 0x35b   : > { %v10287_v16 = vmax.f32 %v9204_v11, 0.0  ;;  %v2350_v52 = vand.u32 4294901760, %v2349_v58  ;;  %v2356_v45 = vsub.f32 %v10321_v14, %v2355_v2 }
 0x35c   : > { %v2369_v18 = vand.u32 4294901760, %v10347_v28  ;;  %v2376_v3 = vand.u32 4294901760, %v10352_v55 }
 0x35d   : > { %v10300_v33 = vand.u32 4294901760, %v10287_v16  ;;  %v2860_v50 = vmul.f32 %v10287_v16, %v10287_v16  ;;  %v2357_v17 = vand.u32 4294901760, %v2356_v45 }
 0x35e   : > { %v2370_v8 = vsub.f32 %v10347_v28, %v2369_v18 }
 0x35f   : > { %v10312_v46 = vsub.f32 %v10287_v16, %v10300_v33  ;;  %v10314_v53 = vand.u32 4294901760, %v2860_v50 }
 0x360   : > { %v2371_v58 = vand.u32 4294901760, %v2370_v8 }
 0x361   : > { %v10329_v4 = vsub.f32 %v2860_v50, %v10314_v53  ;;  %v2302_v11 = vand.u32 4294901760, %v10312_v46  ;;  %v2362_v50 = vand.u32 4294901760, %v10326_v37 }
 0x363   : > { %v2303_v60 = vsub.f32 %v10312_v46, %v2302_v11  ;;  %v2944_v21 = vand.u32 4294901760, %v10329_v4  ;;  %v2363_v56 = vsub.f32 %v10326_v37, %v2362_v50 }
 0x365   : > { %v2304_v36 = vand.u32 4294901760, %v2303_v60  ;;  %v2945_v20 = vsub.f32 %v10329_v4, %v2944_v21  ;;  %v8515_v60 = vpack.c.bf16 %v2350_v52, %v2343_v38  ;;  %v2364_v22 = vand.u32 4294901760, %v2363_v56 }
 0x367   : > { %7035 = vmatmul.mubr.f32.vlgmr.msra.gmra.mrb[2].mxu1 %v2304_v36  ;;  %v2946_v54 = vand.u32 4294901760, %v2945_v20  ;;  %v8545_v36 = vpack.c.bf16 %v10352_v55, %v10347_v28 }
 0x368   : > { %8510 = vmatpush3.bf16.msra.mxu1 %v8509_v34  ;;  %7069 = vmatprep.mubr.msk.f32.mxu1 %vm9362_vm0, %v9363_v1 }
 0x369   : > { %7245 = vmatmul.mubr.f32.vlgmr.msra.gmra.mrb[4].mxu0 %v2946_v54  ;;  %8511 = vmatprep.subr.bf16.mxu1 %v9361_v0  ;;  %v2377_v54 = vsub.f32 %v10352_v55, %v2376_v3 }
 0x36a   : > { %8654 = vmatpush3.bf16.msra.mxu0 %v8509_v34  ;;  %7279 = vmatprep.mubr.msk.f32.mxu0 %vm9362_vm0, %v9363_v1  ;;  %v8518_v34 = vpack.c.bf16 %v2364_v22, %v2357_v17  ;;  %v213_v17 = vld [vmem:[#allocation2 + $0xf0] sm:$0xff] }
 0x36b   : > { %8655 = vmatprep.subr.bf16.mxu0 %v9361_v0  ;;  %v2378_v52 = vand.u32 4294901760, %v2377_v54 }
 0x36c   : > { %8513 = vmatpush3.bf16.msra.mxu1 %v8512_v51 }
 0x36d   : > { %8514 = vmatprep.subr.bf16.mxu1 %v9361_v0  ;;  %v8521_v38 = vpack.c.bf16 %v2378_v52, %v2371_v58  ;;  %v214_v58 = vld [vmem:[#allocation2 + $0xf8] sm:$0xff] }
 0x36e   : > { %8657 = vmatpush3.bf16.msra.mxu0 %v8512_v51  ;;  %v8533_v51 = vpack.c.bf16 %v10262_v35, %v10257_v15  ;;  %v8590_v15 = vpack.c.bf16 %v2362_v50, %v2355_v2  ;;  %v8593_v35 = vpack.c.bf16 %v2376_v3, %v2369_v18  ;;  %v209_v2 = vld [vmem:[#allocation2 + $0xd0] sm:$0xff]  ;;  %v210_v50 = vld [vmem:[#allocation2 + $0xd8] sm:$0xff]  ;;  %v211_v3 = vld [vmem:[#allocation2 + $0xe0] sm:$0xff] }
 0x36f   : > { %8658 = vmatprep.subr.bf16.mxu0 %v9361_v0  ;;  %v3554_v28 = vand.u32 4294901760, %v209_v2  ;;  %v3557_v55 = vand.u32 4294901760, %v210_v50 }
 0x370   : > { %8516 = vmatpush3.bf16.msra.mxu1 %v8515_v60 }
 0x371   : > { %8517 = vmatprep.subr.bf16.mxu1 %v9361_v0 }
 0x372   : > { %8660 = vmatpush3.bf16.msra.mxu0 %v8515_v60  ;;  %v212_v60 = vld [vmem:[#allocation2 + $0xe8] sm:$0xff] }
 0x373   : > { %8661 = vmatprep.subr.bf16.mxu0 %v9361_v0 }
 0x374   : > { %8519 = vmatpush3.bf16.msra.mxu1 %v8518_v34 }
 0x375   : > { %8520 = vmatprep.subr.bf16.mxu1 %v9361_v0 }
 0x376   : > { %8663 = vmatpush3.bf16.msra.mxu0 %v8518_v34 }
 0x377   : > { %8664 = vmatprep.subr.bf16.mxu0 %v9361_v0 }
 0x378   : > { %8522 = vmatpush3.bf16.msra.mxu1 %v8521_v38 }
 0x379   : > { %8523 = vmatprep.subr.bf16.mxu1 %v9361_v0 }
 0x37a   : > { %8666 = vmatpush3.bf16.msra.mxu0 %v8521_v38 }
 0x37b   : > { %8667 = vmatprep.subr.bf16.mxu0 %v9361_v0 }
 0x37c   : > { %8525 = vmatpush3.bf16.msra.mxu1 %v10218_v13 }
 0x37d   : > { %8526 = vmatprep.subr.bf16.mxu1 %v9361_v0 }
 0x37e   : > { %8669 = vmatpush3.bf16.msra.mxu0 %v10218_v13  ;;  %v8536_v13 = vpack.c.bf16 %v10277_v29, %v10272_v24  ;;  %v11396_v24 = vand.u32 4294901760, %v10212_v48  ;;  %v11397_v29 = vand.u32 4294901760, %v10214_v63 }
 0x37f   : > { %8670 = vmatprep.subr.bf16.mxu0 %v9361_v0 }
 0x380   : > { %8528 = vmatpush3.bf16.msra.mxu1 %v10238_v41 }
 0x381   : > { %8529 = vmatprep.subr.bf16.mxu1 %v9361_v0 }
 0x382   : > { %8672 = vmatpush3.bf16.msra.mxu0 %v10238_v41  ;;  %v8539_v41 = vpack.c.bf16 %v10297_v23, %v10292_v47 }
 0x383   : > { %8673 = vmatprep.subr.bf16.mxu0 %v9361_v0 }
 0x384   : > { %8531 = vmatpush3.bf16.msra.mxu1 %v10240_v62 }
 0x385   : > { %8532 = vmatprep.subr.bf16.mxu1 %v9361_v0 }
 0x386   : > { %8675 = vmatpush3.bf16.msra.mxu0 %v10240_v62  ;;  %v8542_v62 = vpack.c.bf16 %v10326_v37, %v10321_v14  ;;  %v207_v14 = vld [vmem:[#allocation2 + $0xc0] sm:$0xff]  ;;  %v208_v37 = vld [vmem:[#allocation2 + $0xc8] sm:$0xff] }
 0x387   : > { %7070 = vmatmul.mubr.f32.vlgmr.msra.gmra.mrb[2].mxu1 %v10300_v33  ;;  %8676 = vmatprep.subr.bf16.mxu0 %v9361_v0 }
 0x388   : > { %8534 = vmatpush3.bf16.msra.mxu1 %v8533_v51  ;;  %7104 = vmatprep.mubr.msk.f32.mxu1 %vm9362_vm0, %v9363_v1 }
 0x389   : > { %7280 = vmatmul.mubr.f32.vlgmr.msra.gmra.mrb[4].mxu0 %v10314_v53  ;;  %8535 = vmatprep.subr.bf16.mxu1 %v9361_v0 }
 0x38a   : > { %8678 = vmatpush3.bf16.msra.mxu0 %v8533_v51  ;;  %7314 = vmatprep.mubr.msk.f32.mxu0 %vm9362_vm0, %v9363_v1  ;;  %v10613_v51 = vpack.c.bf16 %v3557_v55, %v3554_v28 }
 0x38b   : > { %8679 = vmatprep.subr.bf16.mxu0 %v9361_v0 }
 0x38c   : > { %8537 = vmatpush3.bf16.msra.mxu1 %v8536_v13 }
 0x38d   : > { %8538 = vmatprep.subr.bf16.mxu1 %v9361_v0 }
 0x38e   : > { %8681 = vmatpush3.bf16.msra.mxu0 %v8536_v13  ;;  %v10615_v13 = vsub.f32 %v209_v2, %v3554_v28 }
 0x38f   : > { %8682 = vmatprep.subr.bf16.mxu0 %v9361_v0 }
 0x390   : > { %8540 = vmatpush3.bf16.msra.mxu1 %v8539_v41 }
 0x391   : > { %8541 = vmatprep.subr.bf16.mxu1 %v9361_v0 }
 0x392   : > { %8684 = vmatpush3.bf16.msra.mxu0 %v8539_v41  ;;  %v10617_v41 = vsub.f32 %v210_v50, %v3557_v55 }
 0x393   : > { %8685 = vmatprep.subr.bf16.mxu0 %v9361_v0 }
 0x394   : > { %8543 = vmatpush3.bf16.msra.mxu1 %v8542_v62 }
 0x395   : > { %8544 = vmatprep.subr.bf16.mxu1 %v9361_v0 }
 0x396   : > { %8687 = vmatpush3.bf16.msra.mxu0 %v8542_v62  ;;  %v3560_v62 = vand.u32 4294901760, %v211_v3 }
 0x397   : > { %8688 = vmatprep.subr.bf16.mxu0 %v9361_v0 }
 0x398   : > { %8546 = vmatpush3.bf16.msra.mxu1 %v8545_v36 }
 0x399   : > { %8547 = vmatprep.subr.bf16.mxu1 %v9361_v0 }
 0x39a   : > { %8690 = vmatpush3.bf16.msra.mxu0 %v8545_v36  ;;  %v3563_v36 = vand.u32 4294901760, %v212_v60 }
 0x39b   : > { %8691 = vmatprep.subr.bf16.mxu0 %v9361_v0 }
 0x39c   : > { %8549 = vmatpush3.bf16.msra.mxu1 %v10244_v30 }
 0x39d   : > { %8550 = vmatprep.subr.bf16.mxu1 %v9361_v0 }
 0x39e   : > { %8693 = vmatpush3.bf16.msra.mxu0 %v10244_v30  ;;  %v8581_v30 = vpack.c.bf16 %v2320_v12, %v2313_v57  ;;  %v11395_v57 = vand.u32 4294901760, %v10202_v49  ;;  %v11399_v49 = vand.u32 4294901760, %v10225_v19  ;;  %v204_v19 = vld [vmem:[#allocation2 + $0xa8] sm:$0xff] }
 0x39f   : > { %8694 = vmatprep.subr.bf16.mxu0 %v9361_v0  ;;  %v3539_v47 = vand.u32 4294901760, %v204_v19 }
 0x3a0   : > { %8552 = vmatpush3.bf16.msra.mxu1 %v10248_v59  ;;  %v8596_v12 = vpack.c.bf16 %v11395_v57, %v2383_v40  ;;  %v8602_v40 = vpack.c.bf16 %v11399_v49, %v11398_v7 }
 0x3a1   : > { %8553 = vmatprep.subr.bf16.mxu1 %v9361_v0  ;;  %v10603_v8 = vsub.f32 %v204_v19, %v3539_v47 }
 0x3a2   : > { %8696 = vmatpush3.bf16.msra.mxu0 %v10248_v59  ;;  %v8584_v59 = vpack.c.bf16 %v2334_v39, %v2327_v25  ;;  %v8599_v25 = vpack.c.bf16 %v11397_v29, %v11396_v24  ;;  %v3536_v39 = vand.u32 4294901760, %v203_v26 }
 0x3a3   : > { %8697 = vmatprep.subr.bf16.mxu0 %v9361_v0  ;;  %v3652_v19 = vand.u32 4294901760, %v10603_v8 }
 0x3a4   : > { %8555 = vmatpush3.bf16.msra.mxu1 %v10252_v32  ;;  %v10581_v23 = vpack.c.bf16 %v3539_v47, %v3536_v39  ;;  %v10601_v22 = vsub.f32 %v203_v26, %v3536_v39 }
 0x3a5   : > { %8556 = vmatprep.subr.bf16.mxu1 %v9361_v0 }
 0x3a6   : > { %8699 = vmatpush3.bf16.msra.mxu0 %v10252_v32  ;;  %v8587_v32 = vpack.c.bf16 %v2348_v6, %v2341_v42  ;;  %v3645_v26 = vand.u32 4294901760, %v10601_v22 }
 0x3a7   : > { %7105 = vmatmul.mubr.f32.vlgmr.msra.gmra.mrb[2].mxu1 %v10312_v46  ;;  %8700 = vmatprep.subr.bf16.mxu0 %v9361_v0  ;;  %v206_v46 = vld [vmem:[#allocation2 + $0xb8] sm:$0xff] }
 0x3a8   : > { %8558 = vmatpush3.bf16.msra.mxu1 %v10008_v31  ;;  %7139 = vmatprep.mubr.msk.f32.mxu1 %vm9362_vm0, %v9363_v1  ;;  %v3545_v42 = vand.u32 4294901760, %v206_v46  ;;  %v3646_v47 = vsub.f32 %v10601_v22, %v3645_v26 }
 0x3a9   : > { %7315 = vmatmul.mubr.f32.vlgmr.msra.gmra.mrb[4].mxu0 %v10329_v4  ;;  %8559 = vmatprep.subr.bf16.mxu1 %v9361_v0  ;;  %v3548_v4 = vand.u32 4294901760, %v207_v14 }
 0x3aa   : > { %8702 = vmatpush3.bf16.msra.mxu0 %v10008_v31  ;;  %7349 = vmatprep.mubr.msk.f32.mxu0 %vm9362_vm0, %v9363_v1  ;;  %v10607_v34 = vsub.f32 %v206_v46, %v3545_v42  ;;  %v3647_v46 = vand.u32 4294901760, %v3646_v47 }
 0x3ab   : > { %8703 = vmatprep.subr.bf16.mxu0 %v9361_v0  ;;  %v10609_v52 = vsub.f32 %v207_v14, %v3548_v4 }
 0x3ac   : > { %8561 = vmatpush3.bf16.msra.mxu1 %v10015_v9  ;;  %v11371_v14 = vand.u32 4294901760, %v10607_v34 }
 0x3ad   : > { %8562 = vmatprep.subr.bf16.mxu1 %v9361_v0  ;;  %v11370_v28 = vand.u32 4294901760, %v10609_v52 }
 0x3ae   : > { %8705 = vmatpush3.bf16.msra.mxu0 %v10015_v9 }
 0x3af   : > { %8706 = vmatprep.subr.bf16.mxu0 %v9361_v0 }
 0x3b0   : > { %8564 = vmatpush3.bf16.msra.mxu1 %v10033_v27 }
 0x3b1   : > { %8565 = vmatprep.subr.bf16.mxu1 %v9361_v0 }
 0x3b2   : > { %8708 = vmatpush3.bf16.msra.mxu0 %v10033_v27 }
 0x3b3   : > { %8709 = vmatprep.subr.bf16.mxu0 %v9361_v0 }
 0x3b4   : > { %8567 = vmatpush3.bf16.msra.mxu1 %v10051_v44 }
 0x3b5   : > { %8568 = vmatprep.subr.bf16.mxu1 %v9361_v0 }
 0x3b6   : > { %8711 = vmatpush3.bf16.msra.mxu0 %v10051_v44 }
 0x3b7   : > { %8712 = vmatprep.subr.bf16.mxu0 %v9361_v0 }
 0x3b8   : > { %8570 = vmatpush3.bf16.msra.mxu1 %v10069_v10 }
 0x3b9   : > { %8571 = vmatprep.subr.bf16.mxu1 %v9361_v0 }
 0x3ba   : > { %8714 = vmatpush3.bf16.msra.mxu0 %v10069_v10 }
 0x3bb   : > { %8715 = vmatprep.subr.bf16.mxu0 %v9361_v0 }
 0x3bc   : > { %8573 = vmatpush3.bf16.msra.mxu1 %v10182_v43 }
 0x3bd   : > { %8574 = vmatprep.subr.bf16.mxu1 %v9361_v0 }
 0x3be   : > { %8717 = vmatpush3.bf16.msra.mxu0 %v10182_v43 }
 0x3bf   : > { %8718 = vmatprep.subr.bf16.mxu0 %v9361_v0 }
 0x3c0   : > { %8576 = vmatpush3.bf16.msra.mxu1 %v10188_v61 }
 0x3c1   : > { %8577 = vmatprep.subr.bf16.mxu1 %v9361_v0 }
 0x3c2   : > { %8720 = vmatpush3.bf16.msra.mxu0 %v10188_v61 }
 0x3c3   : > { %8721 = vmatprep.subr.bf16.mxu0 %v9361_v0 }
 0x3c4   : > { %8579 = vmatpush3.bf16.msra.mxu1 %v10194_v5 }
 0x3c5   : > { %8580 = vmatprep.subr.bf16.mxu1 %v9361_v0 }
 0x3c6   : > { %8723 = vmatpush3.bf16.msra.mxu0 %v10194_v5 }
 0x3c7   : > { %7140 = vmatmul.mubr.f32.vlgmr.msra.gmra.mrb[2].mxu1 %v2302_v11  ;;  %8724 = vmatprep.subr.bf16.mxu0 %v9361_v0  ;;  %v3551_v11 = vand.u32 4294901760, %v208_v37 }
 0x3c8   : > { %8582 = vmatpush3.bf16.msra.mxu1 %v8581_v30  ;;  %7174 = vmatprep.mubr.msk.f32.mxu1 %vm9362_vm0, %v9363_v1 }
 0x3c9   : > { %7350 = vmatmul.mubr.f32.vlgmr.msra.gmra.mrb[4].mxu0 %v2944_v21  ;;  %8583 = vmatprep.subr.bf16.mxu1 %v9361_v0  ;;  %v10589_v21 = vpack.c.bf16 %v3551_v11, %v3548_v4  ;;  %v10611_v38 = vsub.f32 %v208_v37, %v3551_v11  ;;  %v3667_v11 = vsub.f32 %v10607_v34, %v11371_v14 }
 0x3ca   : > { %8726 = vmatpush3.bf16.msra.mxu0 %v8581_v30  ;;  %7384 = vmatprep.mubr.msk.f32.mxu0 %vm9362_vm0, %v9363_v1  ;;  %v3566_v30 = vand.u32 4294901760, %v213_v17 }
 0x3cb   : > { %8727 = vmatprep.subr.bf16.mxu0 %v9361_v0  ;;  %v3668_v50 = vand.u32 4294901760, %v3667_v11  ;;  %v11369_v55 = vand.u32 4294901760, %v10611_v38 }
 0x3cc   : > { %8585 = vmatpush3.bf16.msra.mxu1 %v8584_v59  ;;  %v10627_v57 = vsub.f32 %v213_v17, %v3566_v30 }
 0x3cd   : > { %8586 = vmatprep.subr.bf16.mxu1 %v9361_v0  ;;  %v3681_v17 = vsub.f32 %v10611_v38, %v11369_v55 }
 0x3ce   : > { %8729 = vmatpush3.bf16.msra.mxu0 %v8584_v59  ;;  %v3569_v59 = vand.u32 4294901760, %v214_v58 }
 0x3cf   : > { %8730 = vmatprep.subr.bf16.mxu0 %v9361_v0 }
 0x3d0   : > { %8588 = vmatpush3.bf16.msra.mxu1 %v8587_v32 }
 0x3d1   : > { %8589 = vmatprep.subr.bf16.mxu1 %v9361_v0 }
 0x3d2   : > { %8732 = vmatpush3.bf16.msra.mxu0 %v8587_v32  ;;  %v10621_v32 = vpack.c.bf16 %v3563_v36, %v3560_v62 }
 0x3d3   : > { %8733 = vmatprep.subr.bf16.mxu0 %v9361_v0 }
 0x3d4   : > { %8591 = vmatpush3.bf16.msra.mxu1 %v8590_v15 }
 0x3d5   : > { %8592 = vmatprep.subr.bf16.mxu1 %v9361_v0 }
 0x3d6   : > { %8735 = vmatpush3.bf16.msra.mxu0 %v8590_v15  ;;  %v10623_v15 = vsub.f32 %v211_v3, %v3560_v62  ;;  %v3682_v62 = vand.u32 4294901760, %v3681_v17 }
 0x3d7   : > { %8736 = vmatprep.subr.bf16.mxu0 %v9361_v0 }
 0x3d8   : > { %8594 = vmatpush3.bf16.msra.mxu1 %v8593_v35 }
 0x3d9   : > { %8595 = vmatprep.subr.bf16.mxu1 %v9361_v0 }
 0x3da   : > { %8738 = vmatpush3.bf16.msra.mxu0 %v8593_v35  ;;  %v10625_v35 = vsub.f32 %v212_v60, %v3563_v36  ;;  %v3674_v60 = vsub.f32 %v10609_v52, %v11370_v28  ;;  %v11368_v36 = vand.u32 4294901760, %v10615_v13  ;;  %v5551_v28 = vld [vmem:[%s11341_s2 + $0x4] ss:$0 sm:$0xff] }
 0x3db   : > { %8739 = vmatprep.subr.bf16.mxu0 %v9361_v0 }
 0x3dc   : > { %8597 = vmatpush3.bf16.msra.mxu1 %v8596_v12 }
 0x3dd   : > { %8598 = vmatprep.subr.bf16.mxu1 %v9361_v0 }
 0x3de   : > { %8741 = vmatpush3.bf16.msra.mxu0 %v8596_v12  ;;  %v10629_v12 = vsub.f32 %v214_v58, %v3569_v59  ;;  %v3675_v58 = vand.u32 4294901760, %v3674_v60 }
 0x3df   : > { %8742 = vmatprep.subr.bf16.mxu0 %v9361_v0 }
 0x3e0   : > { %8600 = vmatpush3.bf16.msra.mxu1 %v8599_v25 }
 0x3e1   : > { %8601 = vmatprep.subr.bf16.mxu1 %v9361_v0 }
 0x3e2   : > { %8744 = vmatpush3.bf16.msra.mxu0 %v8599_v25  ;;  %v10634_v25 = vpack.c.bf16 %v3569_v59, %v3566_v30  ;;  %v11367_v30 = vand.u32 4294901760, %v10617_v41  ;;  %v8809_v59 = vpack.c.bf16 %v3682_v62, %v3675_v58 }
 0x3e3   : > { %8745 = vmatprep.subr.bf16.mxu0 %v9361_v0 }
 0x3e4   : > { %8603 = vmatpush3.bf16.msra.mxu1 %v8602_v40 }
 0x3e5   : > { %8604 = vmatprep.subr.bf16.mxu1 %v9361_v0 }
 0x3e6   : > { %8747 = vmatpush3.bf16.msra.mxu0 %v8602_v40 }
 0x3e7   : > { %7175 = vmatmul.mubr.f32.vlgmr.msra.gmra.mrb[2].mxu1 %v10300_v33  ;;  %8748 = vmatprep.subr.bf16.mxu0 %v9361_v0 }
 0x3e8   : > { %8606 = vmatpush3.bf16.msra.mxu1 %v10008_v31  ;;  %7209 = vmatprep.mubr.msk.f32.mxu1 %vm9362_vm0, %v9363_v1 }
 0x3e9   : > { %7385 = vmatmul.mubr.f32.vlgmr.msra.gmra.mrb[4].mxu0 %v10314_v53  ;;  %8607 = vmatprep.subr.bf16.mxu1 %v9361_v0 }
 0x3ea   : > { %8750 = vmatpush3.bf16.msra.mxu0 %v10008_v31  ;;  %7419 = vmatprep.mubr.msk.f32.mxu0 %vm9362_vm0, %v9363_v1  ;;  %v199_v31 = vld [vmem:[#allocation2 + $0x80] sm:$0xff] }
 0x3eb   : > { %8751 = vmatprep.subr.bf16.mxu0 %v9361_v0 }
 0x3ec   : > { %8609 = vmatpush3.bf16.msra.mxu1 %v10015_v9 }
 0x3ed   : > { %8610 = vmatprep.subr.bf16.mxu1 %v9361_v0 }
 0x3ee   : > { %8753 = vmatpush3.bf16.msra.mxu0 %v10015_v9  ;;  %v200_v9 = vld [vmem:[#allocation2 + $0x88] sm:$0xff] }
 0x3ef   : > { %8754 = vmatprep.subr.bf16.mxu0 %v9361_v0 }
 0x3f0   : > { %8612 = vmatpush3.bf16.msra.mxu1 %v10033_v27 }
 0x3f1   : > { %8613 = vmatprep.subr.bf16.mxu1 %v9361_v0 }
 0x3f2   : > { %8756 = vmatpush3.bf16.msra.mxu0 %v10033_v27  ;;  %v3524_v27 = vand.u32 4294901760, %v199_v31 }
 0x3f3   : > { %8757 = vmatprep.subr.bf16.mxu0 %v9361_v0 }
 0x3f4   : > { %8615 = vmatpush3.bf16.msra.mxu1 %v10051_v44  ;;  %v10593_v20 = vsub.f32 %v199_v31, %v3524_v27 }
 0x3f5   : > { %8616 = vmatprep.subr.bf16.mxu1 %v9361_v0 }
 0x3f6   : > { %8759 = vmatpush3.bf16.msra.mxu0 %v10051_v44  ;;  %v3527_v44 = vand.u32 4294901760, %v200_v9  ;;  %v3617_v24 = vand.u32 4294901760, %v10593_v20 }
 0x3f7   : > { %8760 = vmatprep.subr.bf16.mxu0 %v9361_v0 }
 0x3f8   : > { %8618 = vmatpush3.bf16.msra.mxu1 %v10069_v10  ;;  %v10595_v45 = vsub.f32 %v200_v9, %v3527_v44  ;;  %v3618_v7 = vsub.f32 %v10593_v20, %v3617_v24 }
 0x3f9   : > { %8619 = vmatprep.subr.bf16.mxu1 %v9361_v0 }
 0x3fa   : > { %8762 = vmatpush3.bf16.msra.mxu0 %v10069_v10  ;;  %v10573_v10 = vpack.c.bf16 %v3527_v44, %v3524_v27  ;;  %v3624_v29 = vand.u32 4294901760, %v10595_v45  ;;  %v3619_v40 = vand.u32 4294901760, %v3618_v7  ;;  %v3688_v7 = vsub.f32 %v10615_v13, %v11368_v36  ;;  %v5550_v36 = vld [vmem:[%s11341_s2 + $0x3] ss:$0 sm:$0xff] }
 0x3fb   : > { %8763 = vmatprep.subr.bf16.mxu0 %v9361_v0  ;;  %v8821_v62 = vpack.c.bf16 %v10595_v45, %v10593_v20  ;;  %v8875_v20 = vpack.c.bf16 %v3652_v19, %v3645_v26 }
 0x3fc   : > { %8621 = vmatpush3.bf16.msra.mxu1 %v10182_v43  ;;  %v3625_v49 = vsub.f32 %v10595_v45, %v3624_v29 }
 0x3fd   : > { %8622 = vmatprep.subr.bf16.mxu1 %v9361_v0 }
 0x3fe   : > { %8765 = vmatpush3.bf16.msra.mxu0 %v10182_v43  ;;  %v201_v43 = vld [vmem:[#allocation2 + $0x90] sm:$0xff]  ;;  %v3626_v31 = vand.u32 4294901760, %v3625_v49  ;;  %v3695_v49 = vsub.f32 %v10617_v41, %v11367_v30 }
 0x3ff   : > { %8766 = vmatprep.subr.bf16.mxu0 %v9361_v0 }
 0x400   : > { %8624 = vmatpush3.bf16.msra.mxu1 %v10188_v61  ;;  %v10646_v44 = vpack.c.bf16 %v3626_v31, %v3619_v40  ;;  %v3689_v40 = vand.u32 4294901760, %v3688_v7  ;;  %v3696_v31 = vand.u32 4294901760, %v3695_v49  ;;  %v8827_v49 = vpack.c.bf16 %v10603_v8, %v10601_v22 }
 0x401   : > { %8625 = vmatprep.subr.bf16.mxu1 %v9361_v0  ;;  %v11404_v22 = vand.u32 4294901760, %v10615_v13 }
 0x402   : > { %8768 = vmatpush3.bf16.msra.mxu0 %v10188_v61  ;;  %v202_v61 = vld [vmem:[#allocation2 + $0x98] sm:$0xff] }
 0x403   : > { %8769 = vmatprep.subr.bf16.mxu0 %v9361_v0  ;;  %v3533_v48 = vand.u32 4294901760, %v202_v61 }
 0x404   : > { %8627 = vmatpush3.bf16.msra.mxu1 %v10194_v5 }
 0x405   : > { %8772 = vmatprep.subr.bf16.mxu1 %v9361_v0  ;;  %v10599_v18 = vsub.f32 %v202_v61, %v3533_v48 }
 0x406   : > { %8771 = vmatpush3.bf16.msra.mxu0 %v10194_v5  ;;  %v3530_v5 = vand.u32 4294901760, %v201_v43 }
 0x407   : > { %7210 = vmatmul.mubr.f32.vlgmr.msra.gmra.mrb[2].mxu1 %v10300_v33  ;;  %8916 = vmatprep.subr.bf16.mxu0 %v9361_v0  ;;  %v205_v33 = vld [vmem:[#allocation2 + $0xb0] sm:$0xff]  ;;  %v3638_v27 = vand.u32 4294901760, %v10599_v18 }
 0x408   : > { %7454 = vmatprep.mubr.msk.f32.mxu1 %vm9362_vm0, %v9363_v1  ;;  %8774 = vmatpush3.bf16.msra.mxu1 %v10573_v10  ;;  %v10577_v63 = vpack.c.bf16 %v3533_v48, %v3530_v5  ;;  %v10597_v56 = vsub.f32 %v201_v43, %v3530_v5 }
 0x409   : > { %7420 = vmatmul.mubr.f32.vlgmr.msra.gmra.mrb[4].mxu0 %v10314_v53  ;;  %8775 = vmatprep.subr.bf16.mxu1 %v9361_v0  ;;  %v3542_v53 = vand.u32 4294901760, %v205_v33  ;;  %v3639_v61 = vsub.f32 %v10599_v18, %v3638_v27 }
 0x40a   : > { %7664 = vmatprep.mubr.msk.f32.mxu0 %vm9362_vm0, %v9363_v1  ;;  %v3631_v9 = vand.u32 4294901760, %v10597_v56  ;;  %v8824_v7 = vpack.c.bf16 %v10599_v18, %v10597_v56 }
 0x40b   : > { %v10585_v6 = vpack.c.bf16 %v3545_v42, %v3542_v53  ;;  %v10605_v54 = vsub.f32 %v205_v33, %v3542_v53  ;;  %v3640_v48 = vand.u32 4294901760, %v3639_v61  ;;  %v3653_v33 = vsub.f32 %v10603_v8, %v3652_v19 }
 0x40c   : > { %8777 = vmatpush3.bf16.msra.mxu1 %v10577_v63  ;;  %v3632_v43 = vsub.f32 %v10597_v56, %v3631_v9  ;;  %v11365_v61 = vand.u32 4294901760, %v10625_v35  ;;  %v11401_v56 = vand.u32 4294901760, %v10607_v34  ;;  %v11405_v8 = vand.u32 4294901760, %v10617_v41 }
 0x40d   : > { %8778 = vmatprep.subr.bf16.mxu1 %v9361_v0  ;;  %v3654_v53 = vand.u32 4294901760, %v3653_v33  ;;  %v11372_v42 = vand.u32 4294901760, %v10605_v54  ;;  %v11400_v45 = vand.u32 4294901760, %v10605_v54 }
 0x40e   : > { %v3633_v5 = vand.u32 4294901760, %v3632_v43  ;;  %v11366_v43 = vand.u32 4294901760, %v10623_v15  ;;  %v3709_v47 = vsub.f32 %v10625_v35, %v11365_v61 }
 0x40f   : > { %v10667_v37 = vpack.c.bf16 %v3654_v53, %v3647_v46  ;;  %v3660_v4 = vsub.f32 %v10605_v54, %v11372_v42  ;;  %v11364_v53 = vand.u32 4294901760, %v10627_v57  ;;  %v8878_v18 = vpack.c.bf16 %v11401_v56, %v11400_v45 }
 0x410   : > { %8780 = vmatpush3.bf16.msra.mxu1 %v10581_v23  ;;  %v10657_v39 = vpack.c.bf16 %v3640_v48, %v3633_v5  ;;  %v8812_v5 = vpack.c.bf16 %v3696_v31, %v3689_v40  ;;  %v3702_v48 = vsub.f32 %v10623_v15, %v11366_v43  ;;  %v3710_v46 = vand.u32 4294901760, %v3709_v47 }
 0x411   : > { %8781 = vmatprep.subr.bf16.mxu1 %v9361_v0  ;;  %v3661_v2 = vand.u32 4294901760, %v3660_v4  ;;  %v11363_v4 = vand.u32 4294901760, %v10629_v12  ;;  %v8830_v40 = vpack.c.bf16 %v10607_v34, %v10605_v54  ;;  %v8833_v31 = vpack.c.bf16 %v10611_v38, %v10609_v52 }
 0x412   : > { %v3703_v33 = vand.u32 4294901760, %v3702_v48  ;;  %v8836_v48 = vpack.c.bf16 %v10617_v41, %v10615_v13  ;;  %v8839_v47 = vpack.c.bf16 %v10625_v35, %v10623_v15  ;;  %v11406_v54 = vand.u32 4294901760, %v10623_v15  ;;  %v263_v13 = vld [vmem:[#allocation2 + $0x268] sm:$0xff] }
 0x413   : > { %v10677_v3 = vpack.c.bf16 %v3668_v50, %v3661_v2  ;;  %v3716_v2 = vsub.f32 %v10627_v57, %v11364_v53  ;;  %v3723_v50 = vsub.f32 %v10629_v12, %v11363_v4  ;;  %v11407_v34 = vand.u32 4294901760, %v10625_v35  ;;  %v264_v35 = vld [vmem:[#allocation2 + $0x270] sm:$0xff] }
 0x414   : > { %8783 = vmatpush3.bf16.msra.mxu1 %v10585_v6  ;;  %v8815_v11 = vpack.c.bf16 %v3710_v46, %v3703_v33  ;;  %v8842_v33 = vpack.c.bf16 %v10629_v12, %v10627_v57 }
 0x415   : > { %8784 = vmatprep.subr.bf16.mxu1 %v9361_v0  ;;  %v3717_v60 = vand.u32 4294901760, %v3716_v2  ;;  %v3724_v17 = vand.u32 4294901760, %v3723_v50  ;;  %v8887_v26 = vpack.c.bf16 %v11407_v34, %v11406_v54 }
 0x417   : > { %v8818_v58 = vpack.c.bf16 %v3724_v17, %v3717_v60 }
 0x418   : > { %8786 = vmatpush3.bf16.msra.mxu1 %v10589_v21 }
 0x419   : > { %8787 = vmatprep.subr.bf16.mxu1 %v9361_v0 }
 0x41c   : > { %8789 = vmatpush3.bf16.msra.mxu1 %v10613_v51 }
 0x41d   : > { %8790 = vmatprep.subr.bf16.mxu1 %v9361_v0 }
 0x420   : > { %8792 = vmatpush3.bf16.msra.mxu1 %v10621_v32 }
 0x421   : > { %8793 = vmatprep.subr.bf16.mxu1 %v9361_v0 }
 0x424   : > { %8795 = vmatpush3.bf16.msra.mxu1 %v10634_v25 }
 0x425   : > { %8796 = vmatprep.subr.bf16.mxu1 %v9361_v0 }
 0x4da   : > { %v2856_v46 = vpop.f32.mrb[2].mxu1 }
 0x4db   : > { %v3502_v2 = vmul.f32 %v2856_v46, %v2856_v46  ;;  %v7211_v50 = vpop.f32.mrb[3].mxu1  ;;  %v3505_v43 = vsub.f32 %v10287_v16, %v2856_v46  ;;  %v10804_v46 = vld [vmem:[#allocation2 + $0x238] sm:$0xff] }
 0x4dc   : > { %v3498_v60 = vpop.f32.mrb[4].mxu0 }
 0x4dd   : > { %v3503_v17 = vsub.f32 %v3498_v60, %v3502_v2  ;;  %v7421_v4 = vpop.f32.mrb[5].mxu0 }
 0x4df   : > { %v3504_v53 = vmax.f32 %v3503_v17, 0.0  ;;  %v10820_v17 = vld [vmem:[#allocation2 + $0x240] sm:$0xff] }
 0x4e1   : > { %v3506_v61 = vadd.f32 1e-05, %v3504_v53 }
 0x4e3   : > { %9314 = vrsqrt.f32 %v3506_v61 }
 0x4ed   : > { %v9315_v30 = vpop.eup %9314 }
 0x4ee   : > { %v3508_v55 = vmul.f32 %v9315_v30, %v3505_v43  ;;  %v10784_v43 = vld [vmem:[#allocation2 + $0x220] sm:$0xff] }
 0x4f0   : > { %v3513_v14 = vmul.f32 %v5550_v36, %v3508_v55  ;;  %v10766_v55 = vld [vmem:[#allocation2 + $0x218] sm:$0xff] }
 0x4f1   : > { %v4175_v36 = vand.u32 4294901760, %v10766_v55 }
 0x4f2   : > { %v3518_v50 = vadd.f32 %v5551_v28, %v3513_v14  ;;  %v10764_v28 = vld [vmem:[#allocation2 + $0x210] sm:$0xff] }
 0x4f4   : > { %v10732_v42 = vand.u32 4294901760, %v3518_v50 }
 0x4f6   : > { %v10735_v4 = vsub.f32 %v3518_v50, %v10732_v42  ;;  %v10822_v50 = vld [vmem:[#allocation2 + $0x248] sm:$0xff] }
 0x4f8   : > { %v3606_v61 = vand.u32 4294901760, %v10735_v4 }
 0x4fa   : > { %v3607_v16 = vsub.f32 %v10735_v4, %v3606_v61 }
 0x4fc   : > { %v3608_v53 = vand.u32 4294901760, %v3607_v16  ;;  %v4190_v16 = vand.u32 4294901760, %v10820_v17 }
 0x4fe   : > { %7455 = vmatmul.mubr.f32.vlgmr.msra.gmra.mrb[4].mxu1 %v3608_v53 }
 0x4ff   : > { %8798 = vmatpush3.bf16.msra.mxu1 %v10646_v44  ;;  %7489 = vmatprep.mubr.msk.f32.mxu1 %vm9362_vm0, %v9363_v1  ;;  %v10756_v44 = vld [vmem:[#allocation2 + $0x200] sm:$0xff] }
 0x500   : > { %8799 = vmatprep.subr.bf16.mxu1 %v9361_v0  ;;  %v4166_v14 = vand.u32 4294901760, %v10756_v44 }
 0x503   : > { %8801 = vmatpush3.bf16.msra.mxu1 %v10657_v39  ;;  %v10758_v39 = vld [vmem:[#allocation2 + $0x208] sm:$0xff] }
 0x504   : > { %8802 = vmatprep.subr.bf16.mxu1 %v9361_v0 }
 0x507   : > { %8804 = vmatpush3.bf16.msra.mxu1 %v10667_v37  ;;  %v4169_v37 = vand.u32 4294901760, %v10758_v39 }
 0x508   : > { %8805 = vmatprep.subr.bf16.mxu1 %v9361_v0 }
 0x509   : > { %v10775_v30 = vpack.c.bf16 %v4169_v37, %v4166_v14 }
 0x50b   : > { %8807 = vmatpush3.bf16.msra.mxu1 %v10677_v3  ;;  %v4172_v3 = vand.u32 4294901760, %v10764_v28  ;;  %8918 = vmatpush3.bf16.msra.mxu0 %v10775_v30 }
 0x50c   : > { %8808 = vmatprep.subr.bf16.mxu1 %v9361_v0  ;;  %8919 = vmatprep.subr.bf16.mxu0 %v9361_v0 }
 0x50f   : > { %8810 = vmatpush3.bf16.msra.mxu1 %v8809_v59  ;;  %v10782_v59 = vpack.c.bf16 %v4175_v36, %v4172_v3 }
 0x510   : > { %8811 = vmatprep.subr.bf16.mxu1 %v9361_v0 }
 0x511   : > { %8921 = vmatpush3.bf16.msra.mxu0 %v10782_v59 }
 0x512   : > { %8922 = vmatprep.subr.bf16.mxu0 %v9361_v0 }
 0x513   : > { %8813 = vmatpush3.bf16.msra.mxu1 %v8812_v5  ;;  %v10786_v5 = vld [vmem:[#allocation2 + $0x228] sm:$0xff] }
 0x514   : > { %8814 = vmatprep.subr.bf16.mxu1 %v9361_v0 }
 0x517   : > { %8816 = vmatpush3.bf16.msra.mxu1 %v8815_v11  ;;  %v4178_v11 = vand.u32 4294901760, %v10784_v43 }
 0x518   : > { %8817 = vmatprep.subr.bf16.mxu1 %v9361_v0 }
 0x51b   : > { %8819 = vmatpush3.bf16.msra.mxu1 %v8818_v58  ;;  %v4181_v58 = vand.u32 4294901760, %v10786_v5 }
 0x51c   : > { %8820 = vmatprep.subr.bf16.mxu1 %v9361_v0 }
 0x51e   : > { %7490 = vmatmul.mubr.f32.vlgmr.msra.gmra.mrb[4].mxu1 %v10732_v42 }
 0x51f   : > { %8822 = vmatpush3.bf16.msra.mxu1 %v8821_v62  ;;  %7524 = vmatprep.mubr.msk.f32.mxu1 %vm9362_vm0, %v9363_v1  ;;  %v10800_v62 = vpack.c.bf16 %v4181_v58, %v4178_v11 }
 0x520   : > { %8823 = vmatprep.subr.bf16.mxu1 %v9361_v0 }
 0x521   : > { %8924 = vmatpush3.bf16.msra.mxu0 %v10800_v62 }
 0x522   : > { %8925 = vmatprep.subr.bf16.mxu0 %v9361_v0 }
 0x523   : > { %8825 = vmatpush3.bf16.msra.mxu1 %v8824_v7  ;;  %v10802_v7 = vld [vmem:[#allocation2 + $0x230] sm:$0xff] }
 0x524   : > { %8826 = vmatprep.subr.bf16.mxu1 %v9361_v0  ;;  %v4184_v2 = vand.u32 4294901760, %v10802_v7 }
 0x527   : > { %8828 = vmatpush3.bf16.msra.mxu1 %v8827_v49  ;;  %v4187_v49 = vand.u32 4294901760, %v10804_v46 }
 0x528   : > { %8829 = vmatprep.subr.bf16.mxu1 %v9361_v0 }
 0x529   : > { %v10818_v60 = vpack.c.bf16 %v4187_v49, %v4184_v2 }
 0x52b   : > { %8831 = vmatpush3.bf16.msra.mxu1 %v8830_v40  ;;  %v4193_v40 = vand.u32 4294901760, %v10822_v50  ;;  %8927 = vmatpush3.bf16.msra.mxu0 %v10818_v60 }
 0x52c   : > { %8832 = vmatprep.subr.bf16.mxu1 %v9361_v0  ;;  %8928 = vmatprep.subr.bf16.mxu0 %v9361_v0 }
 0x52d   : > { %v10836_v53 = vpack.c.bf16 %v4193_v40, %v4190_v16 }
 0x52f   : > { %8834 = vmatpush3.bf16.msra.mxu1 %v8833_v31  ;;  %8930 = vmatpush3.bf16.msra.mxu0 %v10836_v53  ;;  %v8869_v31 = vpack.c.bf16 %v3624_v29, %v3617_v24  ;;  %v11402_v24 = vand.u32 4294901760, %v10609_v52  ;;  %v11403_v29 = vand.u32 4294901760, %v10611_v38  ;;  %v11408_v52 = vand.u32 4294901760, %v10627_v57  ;;  %v265_v57 = vld [vmem:[#allocation2 + $0x278] sm:$0xff] }
 0x530   : > { %8835 = vmatprep.subr.bf16.mxu1 %v9361_v0  ;;  %8931 = vmatprep.subr.bf16.mxu0 %v9361_v0  ;;  %v11409_v38 = vand.u32 4294901760, %v10629_v12  ;;  %v4208_v12 = vand.u32 4294901760, %v264_v35 }
 0x532   : > { %v8890_v19 = vpack.c.bf16 %v11409_v38, %v11408_v52 }
 0x533   : > { %8837 = vmatpush3.bf16.msra.mxu1 %v8836_v48  ;;  %v8872_v48 = vpack.c.bf16 %v3638_v27, %v3631_v9  ;;  %v8881_v9 = vpack.c.bf16 %v11403_v29, %v11402_v24  ;;  %v8884_v27 = vpack.c.bf16 %v11405_v8, %v11404_v22  ;;  %v10990_v8 = vsub.f32 %v264_v35, %v4208_v12 }
 0x534   : > { %8838 = vmatprep.subr.bf16.mxu1 %v9361_v0  ;;  %v11024_v35 = vsub.f32 %v10756_v44, %v4166_v14  ;;  %v11044_v44 = vsub.f32 %v10766_v55, %v4175_v36  ;;  %v11057_v55 = vsub.f32 %v10784_v43, %v4178_v11  ;;  %v11062_v36 = vsub.f32 %v10786_v5, %v4181_v58 }
 0x536   : > { %v4287_v5 = vand.u32 4294901760, %v11057_v55  ;;  %v4294_v58 = vand.u32 4294901760, %v11062_v36 }
 0x537   : > { %8840 = vmatpush3.bf16.msra.mxu1 %v8839_v47 }
 0x538   : > { %8841 = vmatprep.subr.bf16.mxu1 %v9361_v0 }
 0x53b   : > { %8843 = vmatpush3.bf16.msra.mxu1 %v8842_v33 }
 0x53c   : > { %8844 = vmatprep.subr.bf16.mxu1 %v9361_v0 }
 0x53e   : > { %7525 = vmatmul.mubr.f32.vlgmr.msra.gmra.mrb[4].mxu1 %v10735_v4 }
 0x53f   : > { %8846 = vmatpush3.bf16.msra.mxu1 %v10573_v10  ;;  %7559 = vmatprep.mubr.msk.f32.mxu1 %vm9362_vm0, %v9363_v1 }
 0x540   : > { %8847 = vmatprep.subr.bf16.mxu1 %v9361_v0 }
 0x543   : > { %8849 = vmatpush3.bf16.msra.mxu1 %v10577_v63 }
 0x544   : > { %8850 = vmatprep.subr.bf16.mxu1 %v9361_v0 }
 0x547   : > { %8852 = vmatpush3.bf16.msra.mxu1 %v10581_v23 }
 0x548   : > { %8853 = vmatprep.subr.bf16.mxu1 %v9361_v0 }
 0x54b   : > { %8855 = vmatpush3.bf16.msra.mxu1 %v10585_v6 }
 0x54c   : > { %8856 = vmatprep.subr.bf16.mxu1 %v9361_v0 }
 0x54f   : > { %8858 = vmatpush3.bf16.msra.mxu1 %v10589_v21 }
 0x550   : > { %8859 = vmatprep.subr.bf16.mxu1 %v9361_v0 }
 0x553   : > { %8861 = vmatpush3.bf16.msra.mxu1 %v10613_v51 }
 0x554   : > { %8862 = vmatprep.subr.bf16.mxu1 %v9361_v0 }
 0x557   : > { %8864 = vmatpush3.bf16.msra.mxu1 %v10621_v32 }
 0x558   : > { %8865 = vmatprep.subr.bf16.mxu1 %v9361_v0 }
 0x55b   : > { %8867 = vmatpush3.bf16.msra.mxu1 %v10634_v25 }
 0x55c   : > { %8868 = vmatprep.subr.bf16.mxu1 %v9361_v0 }
 0x55e   : > { %7560 = vmatmul.mubr.f32.vlgmr.msra.gmra.mrb[4].mxu1 %v3606_v61 }
 0x55f   : > { %8870 = vmatpush3.bf16.msra.mxu1 %v8869_v31  ;;  %7594 = vmatprep.mubr.msk.f32.mxu1 %vm9362_vm0, %v9363_v1 }
 0x560   : > { %8871 = vmatprep.subr.bf16.mxu1 %v9361_v0 }
 0x563   : > { %8873 = vmatpush3.bf16.msra.mxu1 %v8872_v48 }
 0x564   : > { %8874 = vmatprep.subr.bf16.mxu1 %v9361_v0 }
 0x567   : > { %8876 = vmatpush3.bf16.msra.mxu1 %v8875_v20 }
 0x568   : > { %8877 = vmatprep.subr.bf16.mxu1 %v9361_v0 }
 0x56b   : > { %8879 = vmatpush3.bf16.msra.mxu1 %v8878_v18 }
 0x56c   : > { %8880 = vmatprep.subr.bf16.mxu1 %v9361_v0 }
 0x56f   : > { %8882 = vmatpush3.bf16.msra.mxu1 %v8881_v9 }
 0x570   : > { %8883 = vmatprep.subr.bf16.mxu1 %v9361_v0 }
 0x573   : > { %8885 = vmatpush3.bf16.msra.mxu1 %v8884_v27 }
 0x574   : > { %8886 = vmatprep.subr.bf16.mxu1 %v9361_v0 }
 0x577   : > { %8888 = vmatpush3.bf16.msra.mxu1 %v8887_v26  ;;  %v11374_v26 = vand.u32 4294901760, %v10990_v8 }
 0x578   : > { %8889 = vmatprep.subr.bf16.mxu1 %v9361_v0 }
 0x57b   : > { %8891 = vmatpush3.bf16.msra.mxu1 %v8890_v19  ;;  %v4358_v19 = vsub.f32 %v10990_v8, %v11374_v26 }
 0x57c   : > { %8892 = vmatprep.subr.bf16.mxu1 %v9361_v0 }
 0x57e   : > { %7595 = vmatmul.mubr.f32.vlgmr.msra.gmra.mrb[4].mxu1 %v10732_v42 }
 0x57f   : > { %8894 = vmatpush3.bf16.msra.mxu1 %v10573_v10  ;;  %7629 = vmatprep.mubr.msk.f32.mxu1 %vm9362_vm0, %v9363_v1  ;;  %v260_v10 = vld [vmem:[#allocation2 + $0x250] sm:$0xff] }
 0x580   : > { %8895 = vmatprep.subr.bf16.mxu1 %v9361_v0 }
 0x583   : > { %8897 = vmatpush3.bf16.msra.mxu1 %v10577_v63  ;;  %v261_v63 = vld [vmem:[#allocation2 + $0x258] sm:$0xff] }
 0x584   : > { %8898 = vmatprep.subr.bf16.mxu1 %v9361_v0 }
 0x587   : > { %8900 = vmatpush3.bf16.msra.mxu1 %v10581_v23  ;;  %v4196_v23 = vand.u32 4294901760, %v260_v10 }
 0x588   : > { %8901 = vmatprep.subr.bf16.mxu1 %v9361_v0 }
 0x589   : > { %v10967_v47 = vsub.f32 %v260_v10, %v4196_v23 }
 0x58b   : > { %8903 = vmatpush3.bf16.msra.mxu1 %v10585_v6  ;;  %v4199_v6 = vand.u32 4294901760, %v261_v63  ;;  %v4329_v4 = vand.u32 4294901760, %v10967_v47 }
 0x58c   : > { %8904 = vmatprep.subr.bf16.mxu1 %v9361_v0 }
 0x58d   : > { %v10969_v33 = vsub.f32 %v261_v63, %v4199_v6  ;;  %v4330_v31 = vsub.f32 %v10967_v47, %v4329_v4 }
 0x58f   : > { %8906 = vmatpush3.bf16.msra.mxu1 %v10589_v21  ;;  %v10949_v21 = vpack.c.bf16 %v4199_v6, %v4196_v23  ;;  %v4336_v61 = vand.u32 4294901760, %v10969_v33  ;;  %v4331_v56 = vand.u32 4294901760, %v4330_v31  ;;  %v4359_v23 = vand.u32 4294901760, %v4358_v19 }
 0x590   : > { %8907 = vmatprep.subr.bf16.mxu1 %v9361_v0 }
 0x591   : > { %8933 = vmatpush3.bf16.msra.mxu0 %v10949_v21  ;;  %v4337_v48 = vsub.f32 %v10969_v33, %v4336_v61 }
 0x592   : > { %8934 = vmatprep.subr.bf16.mxu0 %v9361_v0 }
 0x593   : > { %8909 = vmatpush3.bf16.msra.mxu1 %v10613_v51  ;;  %v262_v51 = vld [vmem:[#allocation2 + $0x260] sm:$0xff]  ;;  %v4338_v18 = vand.u32 4294901760, %v4337_v48  ;;  %v11039_v48 = vsub.f32 %v10764_v28, %v4172_v3  ;;  %v4280_v28 = vand.u32 4294901760, %v11044_v44 }
 0x594   : > { %8910 = vmatprep.subr.bf16.mxu1 %v9361_v0  ;;  %v4202_v41 = vand.u32 4294901760, %v262_v51 }
 0x595   : > { %v10985_v9 = vpack.c.bf16 %v4338_v18, %v4331_v56 }
 0x596   : > { %v10979_v20 = vsub.f32 %v262_v51, %v4202_v41 }
 0x597   : > { %8912 = vmatpush3.bf16.msra.mxu1 %v10621_v32  ;;  %v4205_v32 = vand.u32 4294901760, %v263_v13 }
 0x598   : > { %8913 = vmatprep.subr.bf16.mxu1 %v9361_v0  ;;  %v11376_v24 = vand.u32 4294901760, %v10979_v20 }
 0x599   : > { %v10955_v15 = vpack.c.bf16 %v4205_v32, %v4202_v41  ;;  %v10981_v45 = vsub.f32 %v263_v13, %v4205_v32  ;;  %v11011_v13 = vpack.c.bf16 %v10969_v33, %v10967_v47  ;;  %v11412_v47 = vand.u32 4294901760, %v10990_v8 }
 0x59a   : > { %v4344_v22 = vsub.f32 %v10979_v20, %v11376_v24 }
 0x59b   : > { %8915 = vmatpush3.bf16.msra.mxu1 %v10634_v25  ;;  %8936 = vmatpush3.bf16.msra.mxu0 %v10955_v15  ;;  %v4211_v25 = vand.u32 4294901760, %v265_v57  ;;  %v11375_v29 = vand.u32 4294901760, %v10981_v45  ;;  %v11015_v41 = vpack.c.bf16 %v10981_v45, %v10979_v20 }
 0x59c   : > { %9060 = vmatprep.subr.bf16.mxu1 %v9361_v0  ;;  %8937 = vmatprep.subr.bf16.mxu0 %v9361_v0  ;;  %v4345_v34 = vand.u32 4294901760, %v4344_v22  ;;  %v4273_v22 = vand.u32 4294901760, %v11039_v48 }
 0x59d   : > { %v10992_v27 = vsub.f32 %v265_v57, %v4211_v25  ;;  %v4351_v54 = vsub.f32 %v10981_v45, %v11375_v29  ;;  %v11029_v57 = vsub.f32 %v10758_v39, %v4169_v37 }
 0x59e   : > { %7630 = vmatmul.mubr.f32.vlgmr.msra.gmra.mrb[4].mxu1 %v10732_v42  ;;  %v10961_v42 = vpack.c.bf16 %v4211_v25, %v4208_v12  ;;  %v5552_v12 = vld [vmem:[%s11341_s2 + $0x5] ss:$0 sm:$0xff]  ;;  %v4259_v25 = vand.u32 4294901760, %v11024_v35 }
 0x59f   : > { %9062 = vmatpush3.bf16.msra.mxu1 %v10775_v30  ;;  %7874 = vmatprep.mubr.msk.f32.mxu1 %vm9362_vm0, %v9363_v1  ;;  %v11373_v52 = vand.u32 4294901760, %v10992_v27  ;;  %v4352_v38 = vand.u32 4294901760, %v4351_v54  ;;  %v11019_v32 = vpack.c.bf16 %v10992_v27, %v10990_v8  ;;  %v4266_v31 = vand.u32 4294901760, %v11029_v57 }
 0x5a0   : > { %9063 = vmatprep.subr.bf16.mxu1 %v9361_v0  ;;  %8939 = vmatpush3.bf16.msra.mxu0 %v10961_v42  ;;  %v4260_v56 = vsub.f32 %v11024_v35, %v4259_v25  ;;  %v11413_v33 = vand.u32 4294901760, %v10992_v27 }
 0x5a1   : > { %8940 = vmatprep.subr.bf16.mxu0 %v9361_v0  ;;  %v4365_v10 = vsub.f32 %v10992_v27, %v11373_v52  ;;  %v11005_v63 = vpack.c.bf16 %v4352_v38, %v4345_v34  ;;  %v4267_v18 = vsub.f32 %v11029_v57, %v4266_v31 }
 0x5a2   : > { %v4261_v38 = vand.u32 4294901760, %v4260_v56 }
 0x5a3   : > { %9065 = vmatpush3.bf16.msra.mxu1 %v10782_v59  ;;  %v4366_v6 = vand.u32 4294901760, %v4365_v10  ;;  %v4268_v19 = vand.u32 4294901760, %v4267_v18  ;;  %v4274_v10 = vsub.f32 %v11039_v48, %v4273_v22 }
 0x5a4   : > { %9066 = vmatprep.subr.bf16.mxu1 %v9361_v0 }
 0x5a5   : > { %v11007_v51 = vpack.c.bf16 %v4366_v6, %v4359_v23  ;;  %v4281_v23 = vsub.f32 %v11044_v44, %v4280_v28  ;;  %v11082_v6 = vsub.f32 %v10802_v7, %v4184_v2  ;;  %v4275_v56 = vand.u32 4294901760, %v4274_v10 }
 0x5a6   : > { %v4288_v2 = vsub.f32 %v11057_v55, %v4287_v5 }
 0x5a7   : > { %9068 = vmatpush3.bf16.msra.mxu1 %v10800_v62  ;;  %v4282_v18 = vand.u32 4294901760, %v4281_v23 }
 0x5a8   : > { %9069 = vmatprep.subr.bf16.mxu1 %v9361_v0  ;;  %v4289_v29 = vand.u32 4294901760, %v4288_v2 }
 0x5a9   : > { %v8944_v26 = vpack.c.bf16 %v4282_v18, %v4275_v56 }
 0x5ab   : > { %9071 = vmatpush3.bf16.msra.mxu1 %v10818_v60 }
 0x5ac   : > { %9072 = vmatprep.subr.bf16.mxu1 %v9361_v0 }
 0x5af   : > { %9074 = vmatpush3.bf16.msra.mxu1 %v10836_v53 }
 0x5b0   : > { %9075 = vmatprep.subr.bf16.mxu1 %v9361_v0 }
 0x5b3   : > { %9077 = vmatpush3.bf16.msra.mxu1 %v10949_v21 }
 0x5b4   : > { %9078 = vmatprep.subr.bf16.mxu1 %v9361_v0 }
 0x5b7   : > { %9080 = vmatpush3.bf16.msra.mxu1 %v10955_v15 }
 0x5b8   : > { %9081 = vmatprep.subr.bf16.mxu1 %v9361_v0 }
 0x5bb   : > { %9083 = vmatpush3.bf16.msra.mxu1 %v10961_v42 }
 0x5bc   : > { %9084 = vmatprep.subr.bf16.mxu1 %v9361_v0 }
 0x671   : > { %v4160_v39 = vpop.f32.mrb[4].mxu1 }
 0x672   : > { %v9205_v14 = vadd.f32 %v5552_v12, %v4160_v39  ;;  %v7631_v37 = vpop.f32.mrb[5].mxu1  ;;  %v11087_v12 = vsub.f32 %v10804_v46, %v4187_v49  ;;  %v4295_v46 = vsub.f32 %v11062_v36, %v4294_v58  ;;  %v4301_v49 = vand.u32 4294901760, %v11082_v6 }
 0x673   : > { %v8941_v37 = vpack.c.bf16 %v4268_v19, %v4261_v38  ;;  %v11108_v38 = vsub.f32 %v10820_v17, %v4190_v16  ;;  %v11113_v19 = vsub.f32 %v10822_v50, %v4193_v40 }
 0x674   : > { %v4164_v3 = vmax.f32 %v9205_v14, 0.0  ;;  %v4296_v24 = vand.u32 4294901760, %v4295_v46  ;;  %v4302_v17 = vsub.f32 %v11082_v6, %v4301_v49 }
 0x675   : > { %v4315_v16 = vand.u32 4294901760, %v11108_v38  ;;  %v4322_v40 = vand.u32 4294901760, %v11113_v19 }
 0x676   : > { %v11064_v54 = vand.u32 4294901760, %v4164_v3  ;;  %v4806_v34 = vmul.f32 %v4164_v3, %v4164_v3  ;;  %v8947_v56 = vpack.c.bf16 %v4296_v24, %v4289_v29  ;;  %v4303_v18 = vand.u32 4294901760, %v4302_v17 }
 0x677   : > { %v4316_v2 = vsub.f32 %v11108_v38, %v4315_v16 }
 0x678   : > { %v11073_v43 = vsub.f32 %v4164_v3, %v11064_v54  ;;  %v11075_v11 = vand.u32 4294901760, %v4806_v34 }
 0x679   : > { %v4317_v46 = vand.u32 4294901760, %v4316_v2 }
 0x67a   : > { %v11090_v39 = vsub.f32 %v4806_v34, %v11075_v11  ;;  %v4248_v14 = vand.u32 4294901760, %v11073_v43  ;;  %v4308_v34 = vand.u32 4294901760, %v11087_v12 }
 0x67c   : > { %v4249_v3 = vsub.f32 %v11073_v43, %v4248_v14  ;;  %v4890_v7 = vand.u32 4294901760, %v11090_v39  ;;  %v4309_v50 = vsub.f32 %v11087_v12, %v4308_v34 }
 0x67e   : > { %v4250_v10 = vand.u32 4294901760, %v4249_v3  ;;  %v4891_v23 = vsub.f32 %v11090_v39, %v4890_v7  ;;  %v4310_v3 = vand.u32 4294901760, %v4309_v50 }
 0x680   : > { %7665 = vmatmul.mubr.f32.vlgmr.msra.gmra.mrb[6].mxu0 %v4250_v10  ;;  %v4892_v52 = vand.u32 4294901760, %v4891_v23  ;;  %v8977_v10 = vpack.c.bf16 %v11113_v19, %v11108_v38 }
 0x681   : > { %8942 = vmatpush3.bf16.msra.mxu0 %v8941_v37  ;;  %7699 = vmatprep.mubr.msk.f32.mxu0 %vm9362_vm0, %v9363_v1 }
 0x682   : > { %7875 = vmatmul.mubr.f32.vlgmr.msra.gmra.mrb[6].mxu1 %v4892_v52  ;;  %8943 = vmatprep.subr.bf16.mxu0 %v9361_v0  ;;  %v4323_v52 = vsub.f32 %v11113_v19, %v4322_v40 }
 0x683   : > { %9086 = vmatpush3.bf16.msra.mxu1 %v8941_v37  ;;  %7909 = vmatprep.mubr.msk.f32.mxu1 %vm9362_vm0, %v9363_v1  ;;  %v8950_v37 = vpack.c.bf16 %v4310_v3, %v4303_v18 }
 0x684   : > { %9087 = vmatprep.subr.bf16.mxu1 %v9361_v0  ;;  %v4324_v24 = vand.u32 4294901760, %v4323_v52 }
 0x685   : > { %8945 = vmatpush3.bf16.msra.mxu0 %v8944_v26 }
 0x686   : > { %8946 = vmatprep.subr.bf16.mxu0 %v9361_v0  ;;  %v8953_v29 = vpack.c.bf16 %v4324_v24, %v4317_v46 }
 0x687   : > { %9089 = vmatpush3.bf16.msra.mxu1 %v8944_v26  ;;  %v8965_v26 = vpack.c.bf16 %v11029_v57, %v11024_v35  ;;  %v9022_v35 = vpack.c.bf16 %v4308_v34, %v4301_v49  ;;  %v9025_v57 = vpack.c.bf16 %v4322_v40, %v4315_v16 }
 0x688   : > { %9090 = vmatprep.subr.bf16.mxu1 %v9361_v0 }
 0x689   : > { %8948 = vmatpush3.bf16.msra.mxu0 %v8947_v56 }
 0x68a   : > { %8949 = vmatprep.subr.bf16.mxu0 %v9361_v0 }
 0x68b   : > { %9092 = vmatpush3.bf16.msra.mxu1 %v8947_v56 }
 0x68c   : > { %9093 = vmatprep.subr.bf16.mxu1 %v9361_v0 }
 0x68d   : > { %8951 = vmatpush3.bf16.msra.mxu0 %v8950_v37 }
 0x68e   : > { %8952 = vmatprep.subr.bf16.mxu0 %v9361_v0 }
 0x68f   : > { %9095 = vmatpush3.bf16.msra.mxu1 %v8950_v37 }
 0x690   : > { %9096 = vmatprep.subr.bf16.mxu1 %v9361_v0 }
 0x691   : > { %8954 = vmatpush3.bf16.msra.mxu0 %v8953_v29 }
 0x692   : > { %8955 = vmatprep.subr.bf16.mxu0 %v9361_v0 }
 0x693   : > { %9098 = vmatpush3.bf16.msra.mxu1 %v8953_v29 }
 0x694   : > { %9099 = vmatprep.subr.bf16.mxu1 %v9361_v0 }
 0x695   : > { %8957 = vmatpush3.bf16.msra.mxu0 %v10985_v9 }
 0x696   : > { %8958 = vmatprep.subr.bf16.mxu0 %v9361_v0 }
 0x697   : > { %9101 = vmatpush3.bf16.msra.mxu1 %v10985_v9  ;;  %v8968_v9 = vpack.c.bf16 %v11044_v44, %v11039_v48  ;;  %v11411_v48 = vand.u32 4294901760, %v10981_v45 }
 0x698   : > { %9102 = vmatprep.subr.bf16.mxu1 %v9361_v0 }
 0x699   : > { %8960 = vmatpush3.bf16.msra.mxu0 %v11005_v63 }
 0x69a   : > { %8961 = vmatprep.subr.bf16.mxu0 %v9361_v0 }
 0x69b   : > { %9104 = vmatpush3.bf16.msra.mxu1 %v11005_v63  ;;  %v8971_v63 = vpack.c.bf16 %v11062_v36, %v11057_v55 }
 0x69c   : > { %9105 = vmatprep.subr.bf16.mxu1 %v9361_v0 }
 0x69d   : > { %8963 = vmatpush3.bf16.msra.mxu0 %v11007_v51 }
 0x69e   : > { %8964 = vmatprep.subr.bf16.mxu0 %v9361_v0 }
 0x69f   : > { %9107 = vmatpush3.bf16.msra.mxu1 %v11007_v51  ;;  %v8974_v51 = vpack.c.bf16 %v11087_v12, %v11082_v6 }
 0x6a0   : > { %7700 = vmatmul.mubr.f32.vlgmr.msra.gmra.mrb[6].mxu0 %v11064_v54  ;;  %9108 = vmatprep.subr.bf16.mxu1 %v9361_v0 }
 0x6a1   : > { %8966 = vmatpush3.bf16.msra.mxu0 %v8965_v26  ;;  %7734 = vmatprep.mubr.msk.f32.mxu0 %vm9362_vm0, %v9363_v1 }
 0x6a2   : > { %7910 = vmatmul.mubr.f32.vlgmr.msra.gmra.mrb[6].mxu1 %v11075_v11  ;;  %8967 = vmatprep.subr.bf16.mxu0 %v9361_v0 }
 0x6a3   : > { %9110 = vmatpush3.bf16.msra.mxu1 %v8965_v26  ;;  %7944 = vmatprep.mubr.msk.f32.mxu1 %vm9362_vm0, %v9363_v1 }
 0x6a4   : > { %9111 = vmatprep.subr.bf16.mxu1 %v9361_v0 }
 0x6a5   : > { %8969 = vmatpush3.bf16.msra.mxu0 %v8968_v9 }
 0x6a6   : > { %8970 = vmatprep.subr.bf16.mxu0 %v9361_v0 }
 0x6a7   : > { %9113 = vmatpush3.bf16.msra.mxu1 %v8968_v9 }
 0x6a8   : > { %9114 = vmatprep.subr.bf16.mxu1 %v9361_v0 }
 0x6a9   : > { %8972 = vmatpush3.bf16.msra.mxu0 %v8971_v63 }
 0x6aa   : > { %8973 = vmatprep.subr.bf16.mxu0 %v9361_v0 }
 0x6ab   : > { %9116 = vmatpush3.bf16.msra.mxu1 %v8971_v63 }
 0x6ac   : > { %9117 = vmatprep.subr.bf16.mxu1 %v9361_v0 }
 0x6ad   : > { %8975 = vmatpush3.bf16.msra.mxu0 %v8974_v51 }
 0x6ae   : > { %8976 = vmatprep.subr.bf16.mxu0 %v9361_v0 }
 0x6af   : > { %9119 = vmatpush3.bf16.msra.mxu1 %v8974_v51 }
 0x6b0   : > { %9120 = vmatprep.subr.bf16.mxu1 %v9361_v0 }
 0x6b1   : > { %8978 = vmatpush3.bf16.msra.mxu0 %v8977_v10 }
 0x6b2   : > { %8979 = vmatprep.subr.bf16.mxu0 %v9361_v0 }
 0x6b3   : > { %9122 = vmatpush3.bf16.msra.mxu1 %v8977_v10 }
 0x6b4   : > { %9123 = vmatprep.subr.bf16.mxu1 %v9361_v0 }
 0x6b5   : > { %8981 = vmatpush3.bf16.msra.mxu0 %v11011_v13 }
 0x6b6   : > { %8982 = vmatprep.subr.bf16.mxu0 %v9361_v0 }
 0x6b7   : > { %9125 = vmatpush3.bf16.msra.mxu1 %v11011_v13  ;;  %v9013_v13 = vpack.c.bf16 %v4266_v31, %v4259_v25  ;;  %v9028_v25 = vpack.c.bf16 %v4336_v61, %v4329_v4  ;;  %v11410_v31 = vand.u32 4294901760, %v10979_v20  ;;  %v9034_v4 = vpack.c.bf16 %v11413_v33, %v11412_v47 }
 0x6b8   : > { %9126 = vmatprep.subr.bf16.mxu1 %v9361_v0 }
 0x6b9   : > { %8984 = vmatpush3.bf16.msra.mxu0 %v11015_v41  ;;  %v9031_v44 = vpack.c.bf16 %v11411_v48, %v11410_v31 }
 0x6ba   : > { %8985 = vmatprep.subr.bf16.mxu0 %v9361_v0 }
 0x6bb   : > { %9128 = vmatpush3.bf16.msra.mxu1 %v11015_v41  ;;  %v9016_v41 = vpack.c.bf16 %v4280_v28, %v4273_v22 }
 0x6bc   : > { %9129 = vmatprep.subr.bf16.mxu1 %v9361_v0 }
 0x6bd   : > { %8987 = vmatpush3.bf16.msra.mxu0 %v11019_v32 }
 0x6be   : > { %8988 = vmatprep.subr.bf16.mxu0 %v9361_v0 }
 0x6bf   : > { %9131 = vmatpush3.bf16.msra.mxu1 %v11019_v32  ;;  %v9019_v32 = vpack.c.bf16 %v4294_v58, %v4287_v5 }
 0x6c0   : > { %7735 = vmatmul.mubr.f32.vlgmr.msra.gmra.mrb[6].mxu0 %v11073_v43  ;;  %9132 = vmatprep.subr.bf16.mxu1 %v9361_v0 }
 0x6c1   : > { %8990 = vmatpush3.bf16.msra.mxu0 %v10775_v30  ;;  %7769 = vmatprep.mubr.msk.f32.mxu0 %vm9362_vm0, %v9363_v1 }
 0x6c2   : > { %7945 = vmatmul.mubr.f32.vlgmr.msra.gmra.mrb[6].mxu1 %v11090_v39  ;;  %8991 = vmatprep.subr.bf16.mxu0 %v9361_v0 }
 0x6c3   : > { %9134 = vmatpush3.bf16.msra.mxu1 %v10775_v30  ;;  %7979 = vmatprep.mubr.msk.f32.mxu1 %vm9362_vm0, %v9363_v1 }
 0x6c4   : > { %9135 = vmatprep.subr.bf16.mxu1 %v9361_v0 }
 0x6c5   : > { %8993 = vmatpush3.bf16.msra.mxu0 %v10782_v59 }
 0x6c6   : > { %8994 = vmatprep.subr.bf16.mxu0 %v9361_v0 }
 0x6c7   : > { %9137 = vmatpush3.bf16.msra.mxu1 %v10782_v59 }
 0x6c8   : > { %9138 = vmatprep.subr.bf16.mxu1 %v9361_v0 }
 0x6c9   : > { %8996 = vmatpush3.bf16.msra.mxu0 %v10800_v62 }
 0x6ca   : > { %8997 = vmatprep.subr.bf16.mxu0 %v9361_v0 }
 0x6cb   : > { %9140 = vmatpush3.bf16.msra.mxu1 %v10800_v62 }
 0x6cc   : > { %9141 = vmatprep.subr.bf16.mxu1 %v9361_v0 }
 0x6cd   : > { %8999 = vmatpush3.bf16.msra.mxu0 %v10818_v60 }
 0x6ce   : > { %9000 = vmatprep.subr.bf16.mxu0 %v9361_v0 }
 0x6cf   : > { %9143 = vmatpush3.bf16.msra.mxu1 %v10818_v60 }
 0x6d0   : > { %9144 = vmatprep.subr.bf16.mxu1 %v9361_v0 }
 0x6d1   : > { %9002 = vmatpush3.bf16.msra.mxu0 %v10836_v53 }
 0x6d2   : > { %9003 = vmatprep.subr.bf16.mxu0 %v9361_v0 }
 0x6d3   : > { %9146 = vmatpush3.bf16.msra.mxu1 %v10836_v53 }
 0x6d4   : > { %9147 = vmatprep.subr.bf16.mxu1 %v9361_v0 }
 0x6d5   : > { %9005 = vmatpush3.bf16.msra.mxu0 %v10949_v21 }
 0x6d6   : > { %9006 = vmatprep.subr.bf16.mxu0 %v9361_v0 }
 0x6d7   : > { %9149 = vmatpush3.bf16.msra.mxu1 %v10949_v21 }
 0x6d8   : > { %9150 = vmatprep.subr.bf16.mxu1 %v9361_v0 }
 0x6d9   : > { %9008 = vmatpush3.bf16.msra.mxu0 %v10955_v15 }
 0x6da   : > { %9009 = vmatprep.subr.bf16.mxu0 %v9361_v0 }
 0x6db   : > { %9152 = vmatpush3.bf16.msra.mxu1 %v10955_v15 }
 0x6dc   : > { %9153 = vmatprep.subr.bf16.mxu1 %v9361_v0 }
 0x6dd   : > { %9011 = vmatpush3.bf16.msra.mxu0 %v10961_v42 }
 0x6de   : > { %9012 = vmatprep.subr.bf16.mxu0 %v9361_v0 }
 0x6df   : > { %9155 = vmatpush3.bf16.msra.mxu1 %v10961_v42 }
 0x6e0   : > { %7770 = vmatmul.mubr.f32.vlgmr.msra.gmra.mrb[6].mxu0 %v4248_v14  ;;  %9156 = vmatprep.subr.bf16.mxu1 %v9361_v0 }
 0x6e1   : > { %9014 = vmatpush3.bf16.msra.mxu0 %v9013_v13  ;;  %7804 = vmatprep.mubr.msk.f32.mxu0 %vm9362_vm0, %v9363_v1 }
 0x6e2   : > { %7980 = vmatmul.mubr.f32.vlgmr.msra.gmra.mrb[6].mxu1 %v4890_v7  ;;  %9015 = vmatprep.subr.bf16.mxu0 %v9361_v0 }
 0x6e3   : > { %9158 = vmatpush3.bf16.msra.mxu1 %v9013_v13  ;;  %8014 = vmatprep.mubr.msk.f32.mxu1 %vm9362_vm0, %v9363_v1 }
 0x6e4   : > { %9159 = vmatprep.subr.bf16.mxu1 %v9361_v0 }
 0x6e5   : > { %9017 = vmatpush3.bf16.msra.mxu0 %v9016_v41 }
 0x6e6   : > { %9018 = vmatprep.subr.bf16.mxu0 %v9361_v0 }
 0x6e7   : > { %9161 = vmatpush3.bf16.msra.mxu1 %v9016_v41 }
 0x6e8   : > { %9162 = vmatprep.subr.bf16.mxu1 %v9361_v0 }
 0x6e9   : > { %9020 = vmatpush3.bf16.msra.mxu0 %v9019_v32 }
 0x6ea   : > { %9021 = vmatprep.subr.bf16.mxu0 %v9361_v0 }
 0x6eb   : > { %9164 = vmatpush3.bf16.msra.mxu1 %v9019_v32 }
 0x6ec   : > { %9165 = vmatprep.subr.bf16.mxu1 %v9361_v0 }
 0x6ed   : > { %9023 = vmatpush3.bf16.msra.mxu0 %v9022_v35 }
 0x6ee   : > { %9024 = vmatprep.subr.bf16.mxu0 %v9361_v0 }
 0x6ef   : > { %9167 = vmatpush3.bf16.msra.mxu1 %v9022_v35 }
 0x6f0   : > { %9168 = vmatprep.subr.bf16.mxu1 %v9361_v0 }
 0x6f1   : > { %9026 = vmatpush3.bf16.msra.mxu0 %v9025_v57 }
 0x6f2   : > { %9027 = vmatprep.subr.bf16.mxu0 %v9361_v0 }
 0x6f3   : > { %9170 = vmatpush3.bf16.msra.mxu1 %v9025_v57 }
 0x6f4   : > { %9171 = vmatprep.subr.bf16.mxu1 %v9361_v0 }
 0x6f5   : > { %9029 = vmatpush3.bf16.msra.mxu0 %v9028_v25 }
 0x6f6   : > { %9030 = vmatprep.subr.bf16.mxu0 %v9361_v0 }
 0x6f7   : > { %9173 = vmatpush3.bf16.msra.mxu1 %v9028_v25 }
 0x6f8   : > { %9174 = vmatprep.subr.bf16.mxu1 %v9361_v0 }
 0x6f9   : > { %9032 = vmatpush3.bf16.msra.mxu0 %v9031_v44 }
 0x6fa   : > { %9033 = vmatprep.subr.bf16.mxu0 %v9361_v0 }
 0x6fb   : > { %9176 = vmatpush3.bf16.msra.mxu1 %v9031_v44 }
 0x6fc   : > { %9177 = vmatprep.subr.bf16.mxu1 %v9361_v0 }
 0x6fd   : > { %9035 = vmatpush3.bf16.msra.mxu0 %v9034_v4 }
 0x6fe   : > { %9036 = vmatprep.subr.bf16.mxu0 %v9361_v0 }
 0x6ff   : > { %9179 = vmatpush3.bf16.msra.mxu1 %v9034_v4 }
 0x700   : > { %7805 = vmatmul.mubr.f32.vlgmr.msra.gmra.mrb[6].mxu0 %v11064_v54  ;;  %9180 = vmatprep.subr.bf16.mxu1 %v9361_v0 }
 0x701   : > { %9038 = vmatpush3.bf16.msra.mxu0 %v10775_v30  ;;  %7839 = vmatprep.mubr.msk.f32.mxu0 %vm9362_vm0, %v9363_v1 }
 0x702   : > { %8015 = vmatmul.mubr.f32.vlgmr.msra.gmra.mrb[6].mxu1 %v11075_v11  ;;  %9039 = vmatprep.subr.bf16.mxu0 %v9361_v0 }
 0x703   : > { %9182 = vmatpush3.bf16.msra.mxu1 %v10775_v30  ;;  %8049 = vmatprep.mubr.msk.f32.mxu1 %vm9362_vm0, %v9363_v1 }
 0x704   : > { %9183 = vmatprep.subr.bf16.mxu1 %v9361_v0 }
 0x705   : > { %9041 = vmatpush3.bf16.msra.mxu0 %v10782_v59 }
 0x706   : > { %9042 = vmatprep.subr.bf16.mxu0 %v9361_v0 }
 0x707   : > { %9185 = vmatpush3.bf16.msra.mxu1 %v10782_v59 }
 0x708   : > { %9186 = vmatprep.subr.bf16.mxu1 %v9361_v0 }
 0x709   : > { %9044 = vmatpush3.bf16.msra.mxu0 %v10800_v62 }
 0x70a   : > { %9045 = vmatprep.subr.bf16.mxu0 %v9361_v0 }
 0x70b   : > { %9188 = vmatpush3.bf16.msra.mxu1 %v10800_v62 }
 0x70c   : > { %9189 = vmatprep.subr.bf16.mxu1 %v9361_v0 }
 0x70d   : > { %9047 = vmatpush3.bf16.msra.mxu0 %v10818_v60 }
 0x70e   : > { %9048 = vmatprep.subr.bf16.mxu0 %v9361_v0 }
 0x70f   : > { %9191 = vmatpush3.bf16.msra.mxu1 %v10818_v60 }
 0x710   : > { %9192 = vmatprep.subr.bf16.mxu1 %v9361_v0 }
 0x711   : > { %9050 = vmatpush3.bf16.msra.mxu0 %v10836_v53 }
 0x712   : > { %9051 = vmatprep.subr.bf16.mxu0 %v9361_v0 }
 0x713   : > { %9194 = vmatpush3.bf16.msra.mxu1 %v10836_v53 }
 0x714   : > { %9195 = vmatprep.subr.bf16.mxu1 %v9361_v0 }
 0x715   : > { %9053 = vmatpush3.bf16.msra.mxu0 %v10949_v21 }
 0x716   : > { %9054 = vmatprep.subr.bf16.mxu0 %v9361_v0 }
 0x717   : > { %9197 = vmatpush3.bf16.msra.mxu1 %v10949_v21 }
 0x718   : > { %9198 = vmatprep.subr.bf16.mxu1 %v9361_v0 }
 0x719   : > { %9056 = vmatpush3.bf16.msra.mxu0 %v10955_v15 }
 0x71a   : > { %9057 = vmatprep.subr.bf16.mxu0 %v9361_v0 }
 0x71b   : > { %9200 = vmatpush3.bf16.msra.mxu1 %v10955_v15 }
 0x71c   : > { %9201 = vmatprep.subr.bf16.mxu1 %v9361_v0  ;;  %v5553_v0 = vld [vmem:[%s11341_s2 + $0x6] ss:$0 sm:$0xff] }
 0x71d   : > { %9059 = vmatpush3.bf16.msra.mxu0 %v10961_v42 }
 0x71f   : > { %9203 = vmatpush3.bf16.msra.mxu1 %v10961_v42 }
 0x720   : > { %7840 = vmatmul.mubr.f32.vlgmr.msra.gmra.mrb[6].mxu0 %v11064_v54 }
 0x722   : > { %8050 = vmatmul.mubr.f32.vlgmr.msra.gmra.mrb[6].mxu1 %v11075_v11 }
 0x7f3   : > { %v4802_v1 = vpop.f32.mrb[6].mxu0 }
 0x7f4   : > { %v5448_v30 = vmul.f32 %v4802_v1, %v4802_v1  ;;  %v7841_v59 = vpop.f32.mrb[7].mxu0 }
 0x7f5   : > { %v5444_v62 = vpop.f32.mrb[6].mxu1 }
 0x7f6   : > { %v5449_v60 = vsub.f32 %v5444_v62, %v5448_v30  ;;  %v8051_v53 = vpop.f32.mrb[7].mxu1 }
 0x7f8   : > { %v5450_v21 = vmax.f32 %v5449_v60, 0.0 }
 0x7fa   : > { %v5451_v61 = vadd.f32 1e-05, %v5450_v21 }
 0x7fc   : > { %9316 = vrsqrt.f32 %v5451_v61 }
 0x806   : > { %v9317_v15 = vpop.eup %9316 }
 0x807   : > { %5454 = vrot.lane.b32.xlu0 %v9317_v15, %s9364_s21 }
 0x80b   : > { %5463 = vrot.lane.b32.xlu0 %v5553_v0, %s9364_s21 }
 0x879   : > { %v5455_v42 = vpop.permute.xlu0 %5454 }
 0x87a   : > { %v5457_v20 = vmul.f32 %v5455_v42, %v4802_v1 }
 0x87d   : > { %v5464_v45 = vpop.permute.xlu0 %5463 }
 0x87e   : > { %v5466_v8 = vadd.f32 %v5464_v45, %v5457_v20 }
 0x880   : > { %5468 = vrot.lane.b32.xlu1 %v5466_v8, %s9365_s24 }
 0x8f2   : > { %v5469_v27 = vpop.permute.xlu1 %5468 }
 0x8f3   : > { %5472 = vst.msk [vmem:[%s180_s27] sm:$0xff] %vm5471_vm1, %v5469_v27 }
 0x8f4 PF: > { %s14_s12 = sadd.s32 1, %s9356_s12  }
 0x8f5   : > { %p11_p3 = scmp.ge.s32.totalorder %s14_s12, 4  }
 0x8f7   :  { %13 = sbr.rel (!%p11_p3) target bundleno = 1 (0x1), region = 71 }
 0x8fe   :  { %5492 = vsyncpa [#allocation3], 1 }
 0x8ff   :  { %5494 = vsyncpa [#allocation3 + $0x1], 1 }

</bundles_post_ra>
